<compile_context>
chip_gen: v7x
topology: tpu7x:2x2x1
jax: 0.10.0
libtpu: 0.0.40
codegen_flags: <defaults>
</compile_context>

<pallas_src>
import functools

import numpy as np

import jax
import jax.numpy as jnp
from jax import lax
from jax.experimental import pallas as pl
from jax.experimental.pallas import tpu as pltpu


# --------------------------------------------------------------------------
# Pallas kernel
# --------------------------------------------------------------------------
def _loss_kernel(states_ref, refs_ref, accel_ref, steer_ref, tpre_ref,
                 sel_ref, w_ref, out_ref, *,
                 horizon, dt, c_dist, c_ang, c_trav, c_smooth, thr2, has_pairs):
    f32 = jnp.float32
    H = horizon
    HIGH = lax.Precision.HIGHEST

    # Initial state / reference rows, lane-dense (1, L).
    x0 = states_ref[0:1, :]
    y0 = states_ref[1:2, :]
    psi0 = states_ref[2:3, :]
    v0 = states_ref[3:4, :]

    rx = refs_ref[0:1, :]
    ry = refs_ref[1:2, :]
    rpsi = refs_ref[2:3, :]

    accel = accel_ref[...]            # (H, L)
    steer = steer_ref[...]            # (H, L)
    tpre = tpre_ref[...]              # (H+1, H) exclusive-prefix-sum matrix

    L = accel.shape[1]

    # ---- prefix-sum rollout on the MXU (no serial recurrence) --------------
    # v_t for t = 0..H (row t = velocity *before* control step t).
    v_full = v0 + jnp.dot(tpre, accel,
                          preferred_element_type=f32, precision=HIGH) * dt
    v_use = v_full[:H]                                        # (H, L)

    # psi history: one block tan() EUP pass, then one prefix-sum matmul.
    th = jnp.tan(steer) * (0.5 * dt)                          # (H, L)
    psih = psi0 + jnp.dot(tpre, v_use * th,
                          preferred_element_type=f32, precision=HIGH)  # (H+1, L)

    # x/y history: block cos/sin EUP passes, then ONE fused prefix-sum matmul
    # (x and y increments concatenated along the lane axis).
    psi_use = psih[:H]                                        # (H, L)
    xy_inc = jnp.concatenate(
        [v_use * jnp.cos(psi_use), v_use * jnp.sin(psi_use)], axis=1)  # (H, 2L)
    xy0 = jnp.concatenate([x0, y0], axis=1)                   # (1, 2L)
    xyh = xy0 + jnp.dot(tpre, xy_inc,
                        preferred_element_type=f32, precision=HIGH) * dt
    xh = xyh[:, :L]                                           # (H+1, L)
    yh = xyh[:, L:]                                           # (H+1, L)

    # ---- distance-to-reference + heading costs (pre-scaled element-wise) ---
    dx = xh - rx
    dy = yh - ry
    point = jnp.sqrt(dx * dx + dy * dy) * c_dist + jnp.abs(psih - rpsi) * c_ang
    cost = jnp.sum(point)

    # ---- pairwise collision cost: single fused +/-1 matmul -----------------
    if has_pairs:
        sel = sel_ref[...].astype(f32)                        # bf16 -> f32 (exact)
        xy_rows = jnp.concatenate([xh, yh], axis=0)           # (2*(H+1), L)
        dpair = jnp.dot(xy_rows, sel,
                        preferred_element_type=f32, precision=HIGH)
        dxp = dpair[:H + 1]
        dyp = dpair[H + 1:]
        d2 = dxp * dxp + dyp * dyp
        pen = jnp.where(d2 < thr2, lax.rsqrt(d2 + 1e-20), 0.0)
        cost = cost + jnp.sum(pen * w_ref[...])               # per-pair weights

    # ---- traveled distance cost --------------------------------------------
    ddx = xh[1:] - xh[:-1]
    ddy = yh[1:] - yh[:-1]
    cost = cost + jnp.sum(jnp.sqrt(ddx * ddx + ddy * ddy)) * c_trav

    # ---- control smoothness cost -------------------------------------------
    if H >= 2:
        cost = cost + jnp.sum(jnp.abs(steer[1:] - steer[:-1])) * c_smooth

    out_ref[...] = jnp.broadcast_to(cost, out_ref.shape).astype(jnp.float32)


# --------------------------------------------------------------------------
# Wrapper (layout glue + pallas_call)
# --------------------------------------------------------------------------
def _round_up(n, m):
    return ((n + m - 1) // m) * m


def loss_forward(states, refs, controls, *, horizon, num_vehicle,
                 distance_cost, angle_cost, velocity_cost, smoothness_cost,
                 traveled_distance_cost, collision_cost,
                 collision_threshold=5, dt=0.2):
    # velocity_cost is accepted for parity with the PyTorch __init__ but is
    # unused in the original forward pass.
    del velocity_cost

    B = states.shape[0]
    V = num_vehicle
    H = horizon
    assert H >= 1
    assert states.shape[1] == V and states.shape[2] == 4
    assert refs.shape[1] == V and refs.shape[2] == 3
    assert controls.shape[1] == H and controls.shape[2] == V
    assert controls.shape[3] == 2

    BV = B * V
    pairs = [(i, j) for i in range(V - 1) for j in range(i + 1, V)]
    NP = B * len(pairs)
    L = _round_up(max(BV, NP, 1), 128)           # lane-dense padded width

    f32 = jnp.float32

    def pad_lanes(a):
        return jnp.pad(a, ((0, 0), (0, L - a.shape[1])))

    states_t = pad_lanes(jnp.transpose(states.astype(f32), (2, 0, 1)).reshape(4, BV))
    refs_t = pad_lanes(jnp.transpose(refs.astype(f32), (2, 0, 1)).reshape(3, BV))
    ctrl = controls.astype(f32)
    accel_t = pad_lanes(jnp.transpose(ctrl[:, :, :, 0], (1, 0, 2)).reshape(H, BV))
    steer_t = pad_lanes(jnp.transpose(ctrl[:, :, :, 1], (1, 0, 2)).reshape(H, BV))

    # Exclusive prefix-sum matrix: tpre[t, s] = 1 if s < t, shape (H+1, H).
    tpre_np = (np.arange(H + 1)[:, None] > np.arange(H)[None, :]).astype(np.float32)
    tpre = jnp.asarray(tpre_np)

    # Static +/-1 pair-difference selection matrix (bf16; +/-1 exact) and
    # per-pair f32 weights.  Column p holds (vehicle i) - (vehicle j) within
    # one batch; its weight carries collision_cost and the original per-group
    # mean denominator 1 / (B * (V - 1 - i)).
    sel_np = np.zeros((L, L), np.float32)
    w_np = np.zeros((1, L), np.float32)
    col = 0
    for b in range(B):
        for (i, j) in pairs:
            sel_np[b * V + i, col] = 1.0
            sel_np[b * V + j, col] = -1.0
            w_np[0, col] = float(collision_cost) / (B * (V - 1 - i))
            col += 1
    sel = jnp.asarray(sel_np, dtype=jnp.bfloat16)
    w = jnp.asarray(w_np)

    kernel = functools.partial(
        _loss_kernel,
        horizon=H,
        dt=float(dt),
        c_dist=float(distance_cost) / ((H + 1) * BV),
        c_ang=float(angle_cost) / ((H + 1) * BV),
        c_trav=float(traveled_distance_cost) / BV,
        c_smooth=float(smoothness_cost) / BV,
        thr2=float(collision_threshold) ** 2,
        has_pairs=NP > 0,
    )

    out = pl.pallas_call(
        kernel,
        out_shape=jax.ShapeDtypeStruct((1, 1), jnp.float32),
        in_specs=[pl.BlockSpec(memory_space=pltpu.MemorySpace.VMEM)] * 7,
        out_specs=pl.BlockSpec(memory_space=pltpu.MemorySpace.VMEM),
    )(states_t, refs_t, accel_t, steer_t, tpre, sel, w)
    return out[0, 0]


# --------------------------------------------------------------------------
# Pure-JAX reference (direct transcription of the PyTorch forward)
# --------------------------------------------------------------------------
def loss_reference(states, refs, controls, *, horizon, num_vehicle,
                   distance_cost, angle_cost, velocity_cost, smoothness_cost,
                   traveled_distance_cost, collision_cost,
                   collision_threshold=5, dt=0.2):
    del velocity_cost
    states = states.astype(jnp.float32)
    refs = refs.astype(jnp.float32)
    controls = controls.astype(jnp.float32)

    def plant(prev, ctrl):
        x_t = prev[:, :, 0] + prev[:, :, 3] * jnp.cos(prev[:, :, 2]) * dt
        y_t = prev[:, :, 1] + prev[:, :, 3] * jnp.sin(prev[:, :, 2]) * dt
        psi_t = prev[:, :, 2] + prev[:, :, 3] * dt * jnp.tan(ctrl[:, :, 1]) / 2.0
        v_t = prev[:, :, 3] + ctrl[:, :, 0] * dt
        return jnp.stack([x_t, y_t, psi_t, v_t], axis=2)

    hist = [states]
    cur = states
    for i in range(horizon):
        cur = plant(cur, controls[:, i])
        hist.append(cur)
    sh = jnp.stack(hist, axis=0)                               # (H+1, B, V, 4)

    cost = 0.0
    cost += jnp.mean(jnp.linalg.norm(sh[:, :, :, :2] - refs[:, :, :2], axis=3)) * distance_cost
    cost += jnp.mean(jnp.abs(sh[:, :, :, 2] - refs[:, :, 2])) * angle_cost
    cost += jnp.mean(jnp.sum(jnp.abs(jnp.diff(controls[:, :, :, 1], axis=1)), axis=1)) * smoothness_cost
    cost += jnp.mean(jnp.sum(jnp.linalg.norm(jnp.abs(jnp.diff(sh[:, :, :, :2], axis=0)), axis=3), axis=0)) * traveled_distance_cost
    for i in range(num_vehicle - 1):
        d = sh[:, :, i, :2][:, :, None, :] - sh[:, :, i + 1:, :2]
        d = jnp.linalg.norm(d, axis=-1) + 1e-10
        cost += jnp.mean(jnp.sum(collision_cost / d * (d < collision_threshold), axis=0))
    return cost


# --------------------------------------------------------------------------
if __name__ == "__main__":
    B, V, H = 2, 4, 8
    params = dict(
        horizon=H,
        num_vehicle=V,
        distance_cost=1.0,
        angle_cost=0.5,
        velocity_cost=0.1,          # unused in forward (as in the PyTorch module)
        smoothness_cost=0.2,
        traveled_distance_cost=0.3,
        collision_cost=2.0,
        collision_threshold=5,
    )

    key = jax.random.PRNGKey(0)
    k1, k2, k3 = jax.random.split(key, 3)
    states = jax.random.normal(k1, (B, V, 4), dtype=jnp.float32) * 2.0
    refs = jax.random.normal(k2, (B, V, 3), dtype=jnp.float32) * 2.0
    controls = jax.random.normal(k3, (B, H, V, 2), dtype=jnp.float32) * 0.3

    out = loss_forward(states, refs, controls, **params)
    out = jax.block_until_ready(out)

    ref = jax.block_until_ready(loss_reference(states, refs, controls, **params))
    assert jnp.allclose(out, ref, rtol=1e-3, atol=1e-3), (out, ref)

    print("KERNEL_OK")
</pallas_src>

<mosaic_0001>
module attributes {stable_mosaic.version = 11 : i64} {
  func.func @_loss_kernel(%arg0: memref<4x128xf32, #tpu.memory_space<vmem>>, %arg1: memref<3x128xf32, #tpu.memory_space<vmem>>, %arg2: memref<8x128xf32, #tpu.memory_space<vmem>>, %arg3: memref<8x128xf32, #tpu.memory_space<vmem>>, %arg4: memref<9x8xf32, #tpu.memory_space<vmem>>, %arg5: memref<128x128xbf16, #tpu.memory_space<vmem>>, %arg6: memref<1x128xf32, #tpu.memory_space<vmem>>, %arg7: memref<1x1xf32, #tpu.memory_space<vmem>>) attributes {dimension_semantics = [], scalar_prefetch = 0 : i64, scratch_operands = 0 : i64, tpu.core_type = #tpu.core_type<tc>} {
    %c0 = arith.constant 0 : index
    %c0_0 = arith.constant 0 : index
    %0 = vector.load %arg0[%c0, %c0_0] : memref<4x128xf32, #tpu.memory_space<vmem>>, vector<1x128xf32>
    %c1 = arith.constant 1 : index
    %c0_1 = arith.constant 0 : index
    %1 = vector.load %arg0[%c1, %c0_1] : memref<4x128xf32, #tpu.memory_space<vmem>>, vector<1x128xf32>
    %c2 = arith.constant 2 : index
    %c0_2 = arith.constant 0 : index
    %2 = vector.load %arg0[%c2, %c0_2] : memref<4x128xf32, #tpu.memory_space<vmem>>, vector<1x128xf32>
    %c3 = arith.constant 3 : index
    %c0_3 = arith.constant 0 : index
    %3 = vector.load %arg0[%c3, %c0_3] : memref<4x128xf32, #tpu.memory_space<vmem>>, vector<1x128xf32>
    %c0_4 = arith.constant 0 : index
    %c0_5 = arith.constant 0 : index
    %4 = vector.load %arg1[%c0_4, %c0_5] : memref<3x128xf32, #tpu.memory_space<vmem>>, vector<1x128xf32>
    %c1_6 = arith.constant 1 : index
    %c0_7 = arith.constant 0 : index
    %5 = vector.load %arg1[%c1_6, %c0_7] : memref<3x128xf32, #tpu.memory_space<vmem>>, vector<1x128xf32>
    %c2_8 = arith.constant 2 : index
    %c0_9 = arith.constant 0 : index
    %6 = vector.load %arg1[%c2_8, %c0_9] : memref<3x128xf32, #tpu.memory_space<vmem>>, vector<1x128xf32>
    %c0_10 = arith.constant 0 : index
    %c0_11 = arith.constant 0 : index
    %7 = vector.load %arg2[%c0_10, %c0_11] : memref<8x128xf32, #tpu.memory_space<vmem>>, vector<8x128xf32>
    %c0_12 = arith.constant 0 : index
    %c0_13 = arith.constant 0 : index
    %8 = vector.load %arg3[%c0_12, %c0_13] : memref<8x128xf32, #tpu.memory_space<vmem>>, vector<8x128xf32>
    %c0_14 = arith.constant 0 : index
    %c0_15 = arith.constant 0 : index
    %9 = vector.load %arg4[%c0_14, %c0_15] : memref<9x8xf32, #tpu.memory_space<vmem>>, vector<9x8xf32>
    %cst = arith.constant dense<0.000000e+00> : vector<9x128xf32>
    %10 = tpu.matmul %9, %7, %cst {dimension_numbers = #tpu.dot_dimension_numbers<[1], [0], [0], [1], [0, 0, 1, 1], [], []>, precision = #tpu.contract_precision<fp32>} : vector<9x8xf32>, vector<8x128xf32>, vector<9x128xf32> -> vector<9x128xf32>
    %cst_16 = arith.constant 2.000000e-01 : f32
    %11 = vector.broadcast %cst_16 : f32 to vector<9x128xf32>
    %12 = arith.mulf %10, %11 : vector<9x128xf32>
    %13 = vector.broadcast %3 : vector<1x128xf32> to vector<9x128xf32>
    %14 = arith.addf %13, %12 : vector<9x128xf32>
    %15 = vector.extract_strided_slice %14 {offsets = [0, 0], sizes = [8, 128], strides = [1, 1]} : vector<9x128xf32> to vector<8x128xf32>
    %16 = math.tan %8 : vector<8x128xf32>
    %cst_17 = arith.constant 1.000000e-01 : f32
    %17 = vector.broadcast %cst_17 : f32 to vector<8x128xf32>
    %18 = arith.mulf %16, %17 : vector<8x128xf32>
    %19 = arith.mulf %15, %18 : vector<8x128xf32>
    %cst_18 = arith.constant dense<0.000000e+00> : vector<9x128xf32>
    %20 = tpu.matmul %9, %19, %cst_18 {dimension_numbers = #tpu.dot_dimension_numbers<[1], [0], [0], [1], [0, 0, 1, 1], [], []>, precision = #tpu.contract_precision<fp32>} : vector<9x8xf32>, vector<8x128xf32>, vector<9x128xf32> -> vector<9x128xf32>
    %21 = vector.broadcast %2 : vector<1x128xf32> to vector<9x128xf32>
    %22 = arith.addf %21, %20 : vector<9x128xf32>
    %23 = vector.extract_strided_slice %22 {offsets = [0, 0], sizes = [8, 128], strides = [1, 1]} : vector<9x128xf32> to vector<8x128xf32>
    %24 = math.cos %23 : vector<8x128xf32>
    %25 = arith.mulf %15, %24 : vector<8x128xf32>
    %26 = math.sin %23 : vector<8x128xf32>
    %27 = arith.mulf %15, %26 : vector<8x128xf32>
    %28 = tpu.concatenate %25, %27 in 1 : vector<8x128xf32>, vector<8x128xf32> -> vector<8x256xf32>
    %29 = tpu.concatenate %0, %1 in 1 : vector<1x128xf32>, vector<1x128xf32> -> vector<1x256xf32>
    %cst_19 = arith.constant dense<0.000000e+00> : vector<9x256xf32>
    %30 = tpu.matmul %9, %28, %cst_19 {dimension_numbers = #tpu.dot_dimension_numbers<[1], [0], [0], [1], [0, 0, 1, 1], [], []>, precision = #tpu.contract_precision<fp32>} : vector<9x8xf32>, vector<8x256xf32>, vector<9x256xf32> -> vector<9x256xf32>
    %cst_20 = arith.constant 2.000000e-01 : f32
    %31 = vector.broadcast %cst_20 : f32 to vector<9x256xf32>
    %32 = arith.mulf %30, %31 : vector<9x256xf32>
    %33 = vector.broadcast %29 : vector<1x256xf32> to vector<9x256xf32>
    %34 = arith.addf %33, %32 : vector<9x256xf32>
    %35 = vector.extract_strided_slice %34 {offsets = [0, 0], sizes = [9, 128], strides = [1, 1]} : vector<9x256xf32> to vector<9x128xf32>
    %36 = vector.extract_strided_slice %34 {offsets = [0, 128], sizes = [9, 128], strides = [1, 1]} : vector<9x256xf32> to vector<9x128xf32>
    %37 = vector.broadcast %4 : vector<1x128xf32> to vector<9x128xf32>
    %38 = arith.subf %35, %37 : vector<9x128xf32>
    %39 = vector.broadcast %5 : vector<1x128xf32> to vector<9x128xf32>
    %40 = arith.subf %36, %39 : vector<9x128xf32>
    %41 = arith.mulf %38, %38 : vector<9x128xf32>
    %42 = arith.mulf %40, %40 : vector<9x128xf32>
    %43 = arith.addf %41, %42 : vector<9x128xf32>
    %44 = math.sqrt %43 : vector<9x128xf32>
    %cst_21 = arith.constant 0.013888889 : f32
    %45 = vector.broadcast %cst_21 : f32 to vector<9x128xf32>
    %46 = arith.mulf %44, %45 : vector<9x128xf32>
    %47 = vector.broadcast %6 : vector<1x128xf32> to vector<9x128xf32>
    %48 = arith.subf %22, %47 : vector<9x128xf32>
    %49 = math.absf %48 : vector<9x128xf32>
    %cst_22 = arith.constant 0.0069444445 : f32
    %50 = vector.broadcast %cst_22 : f32 to vector<9x128xf32>
    %51 = arith.mulf %49, %50 : vector<9x128xf32>
    %52 = arith.addf %46, %51 : vector<9x128xf32>
    %53 = vector.shape_cast %52 : vector<9x128xf32> to vector<1x9x128xf32>
    %cst_23 = arith.constant dense<0.000000e+00> : vector<1xf32>
    %54 = vector.multi_reduction <add>, %53, %cst_23 [1, 2] : vector<1x9x128xf32> to vector<1xf32>
    %55 = vector.shape_cast %54 : vector<1xf32> to vector<1x1x1xf32>
    %56 = vector.extract %55[0, 0, 0] : f32 from vector<1x1x1xf32>
    %c0_24 = arith.constant 0 : index
    %c0_25 = arith.constant 0 : index
    %57 = vector.load %arg5[%c0_24, %c0_25] : memref<128x128xbf16, #tpu.memory_space<vmem>>, vector<128x128xbf16>
    %58 = arith.extf %57 : vector<128x128xbf16> to vector<128x128xf32>
    %59 = tpu.concatenate %35, %36 in 0 : vector<9x128xf32>, vector<9x128xf32> -> vector<18x128xf32>
    %cst_26 = arith.constant dense<0.000000e+00> : vector<18x128xf32>
    %60 = tpu.matmul %59, %58, %cst_26 {dimension_numbers = #tpu.dot_dimension_numbers<[1], [0], [0], [1], [0, 0, 1, 1], [], []>, precision = #tpu.contract_precision<fp32>} : vector<18x128xf32>, vector<128x128xf32>, vector<18x128xf32> -> vector<18x128xf32>
    %61 = vector.extract_strided_slice %60 {offsets = [0, 0], sizes = [9, 128], strides = [1, 1]} : vector<18x128xf32> to vector<9x128xf32>
    %62 = vector.extract_strided_slice %60 {offsets = [9, 0], sizes = [9, 128], strides = [1, 1]} : vector<18x128xf32> to vector<9x128xf32>
    %63 = arith.mulf %61, %61 : vector<9x128xf32>
    %64 = arith.mulf %62, %62 : vector<9x128xf32>
    %65 = arith.addf %63, %64 : vector<9x128xf32>
    %cst_27 = arith.constant 2.500000e+01 : f32
    %66 = vector.broadcast %cst_27 : f32 to vector<9x128xf32>
    %67 = arith.cmpf olt, %65, %66 : vector<9x128xf32>
    %cst_28 = arith.constant 9.99999968E-21 : f32
    %68 = vector.broadcast %cst_28 : f32 to vector<9x128xf32>
    %69 = arith.addf %65, %68 : vector<9x128xf32>
    %70 = math.rsqrt %69 : vector<9x128xf32>
    %cst_29 = arith.constant 0.000000e+00 : f32
    %71 = vector.broadcast %cst_29 : f32 to vector<9x128xf32>
    %72 = arith.select %67, %70, %71 : vector<9x128xi1>, vector<9x128xf32>
    %c0_30 = arith.constant 0 : index
    %c0_31 = arith.constant 0 : index
    %73 = vector.load %arg6[%c0_30, %c0_31] : memref<1x128xf32, #tpu.memory_space<vmem>>, vector<1x128xf32>
    %74 = vector.broadcast %73 : vector<1x128xf32> to vector<9x128xf32>
    %75 = arith.mulf %72, %74 : vector<9x128xf32>
    %76 = vector.shape_cast %75 : vector<9x128xf32> to vector<1x9x128xf32>
    %cst_32 = arith.constant dense<0.000000e+00> : vector<1xf32>
    %77 = vector.multi_reduction <add>, %76, %cst_32 [1, 2] : vector<1x9x128xf32> to vector<1xf32>
    %78 = vector.shape_cast %77 : vector<1xf32> to vector<1x1x1xf32>
    %79 = vector.extract %78[0, 0, 0] : f32 from vector<1x1x1xf32>
    %80 = arith.addf %56, %79 : f32
    %81 = vector.extract_strided_slice %35 {offsets = [1, 0], sizes = [8, 128], strides = [1, 1]} : vector<9x128xf32> to vector<8x128xf32>
    %82 = vector.extract_strided_slice %35 {offsets = [0, 0], sizes = [8, 128], strides = [1, 1]} : vector<9x128xf32> to vector<8x128xf32>
    %83 = arith.subf %81, %82 : vector<8x128xf32>
    %84 = vector.extract_strided_slice %36 {offsets = [1, 0], sizes = [8, 128], strides = [1, 1]} : vector<9x128xf32> to vector<8x128xf32>
    %85 = vector.extract_strided_slice %36 {offsets = [0, 0], sizes = [8, 128], strides = [1, 1]} : vector<9x128xf32> to vector<8x128xf32>
    %86 = arith.subf %84, %85 : vector<8x128xf32>
    %87 = arith.mulf %83, %83 : vector<8x128xf32>
    %88 = arith.mulf %86, %86 : vector<8x128xf32>
    %89 = arith.addf %87, %88 : vector<8x128xf32>
    %90 = math.sqrt %89 : vector<8x128xf32>
    %91 = vector.shape_cast %90 : vector<8x128xf32> to vector<1x8x128xf32>
    %cst_33 = arith.constant dense<0.000000e+00> : vector<1xf32>
    %92 = vector.multi_reduction <add>, %91, %cst_33 [1, 2] : vector<1x8x128xf32> to vector<1xf32>
    %93 = vector.shape_cast %92 : vector<1xf32> to vector<1x1x1xf32>
    %94 = vector.extract %93[0, 0, 0] : f32 from vector<1x1x1xf32>
    %cst_34 = arith.constant 3.750000e-02 : f32
    %95 = arith.mulf %94, %cst_34 : f32
    %96 = arith.addf %80, %95 : f32
    %97 = vector.extract_strided_slice %8 {offsets = [1, 0], sizes = [7, 128], strides = [1, 1]} : vector<8x128xf32> to vector<7x128xf32>
    %98 = vector.extract_strided_slice %8 {offsets = [0, 0], sizes = [7, 128], strides = [1, 1]} : vector<8x128xf32> to vector<7x128xf32>
    %99 = arith.subf %97, %98 : vector<7x128xf32>
    %100 = math.absf %99 : vector<7x128xf32>
    %101 = vector.shape_cast %100 : vector<7x128xf32> to vector<1x7x128xf32>
    %cst_35 = arith.constant dense<0.000000e+00> : vector<1xf32>
    %102 = vector.multi_reduction <add>, %101, %cst_35 [1, 2] : vector<1x7x128xf32> to vector<1xf32>
    %103 = vector.shape_cast %102 : vector<1xf32> to vector<1x1x1xf32>
    %104 = vector.extract %103[0, 0, 0] : f32 from vector<1x1x1xf32>
    %cst_36 = arith.constant 2.500000e-02 : f32
    %105 = arith.mulf %104, %cst_36 : f32
    %106 = arith.addf %96, %105 : f32
    %107 = vector.broadcast %106 : f32 to vector<1x1xf32>
    %c0_37 = arith.constant 0 : index
    %c0_38 = arith.constant 0 : index
    %108 = vector.load %arg7[%c0_37, %c0_38] : memref<1x1xf32, #tpu.memory_space<vmem>>, vector<1x1xf32>
    tpu.vector_store %arg7[%c0_37, %c0_38], %107 {strides = array<i32>} : memref<1x1xf32, #tpu.memory_space<vmem>>, vector<1x1xf32>,
    return
  }
}

</mosaic_0001>

<bundles_post_ra>
// kernel: tpu_custom_call.1
= control target key start
LH: loop header
LB: loop body
LE: loop exit
PB: predicated region body
PF: predicated region fallthrough
CT: control target
= control target key end

     0   :  { %12 = vsyncpa [#allocation3], 0  ;;  %s4227_s0 = inlined_call_operand.vmem [shape: f32[4,128], index: 0, kind: input, shape index: {}]   ;;  %s4228_s1 = inlined_call_operand.vmem [shape: f32[3,128], index: 1, kind: input, shape index: {}]   ;;  %s4229_s2 = inlined_call_operand.vmem [shape: f32[8,128], index: 2, kind: input, shape index: {}]   ;;  %s4230_s3 = inlined_call_operand.vmem [shape: f32[8,128], index: 3, kind: input, shape index: {}]   ;;  %s4231_s4 = inlined_call_operand.vmem [shape: f32[9,8], index: 4, kind: input, shape index: {}]   ;;  %s4232_s5 = inlined_call_operand.hbm [shape: bf16[128,128], index: 5, kind: input, shape index: {}]   ;;  %s4233_s6 = inlined_call_operand.vmem [shape: f32[1,128], index: 6, kind: input, shape index: {}]   ;;  %s4234_s7 = inlined_call_operand.hbm [shape: f32[1,1], index: 7, kind: output, shape index: {}]  }
   0x1   :  { %13 = vsyncpa [#allocation4], 0  ;;  %s3578_s24 = smov [#allocation2]   ;;  %s3530_s28 = scalar_lea.hbm %s4232_s5, 1024 }
   0x2   :  { %s29_s25 = sshll.u32 %s3578_s24, 4  ;;  %p3531_p0 = scmp.ne.s32.totalorder %s4232_s5, %s3530_s28  ;;  %s30_s25 = int_to_ptr.vmem [resolvable:$true] %s29_s25 }
   0x3   :  { %p3534_p1 = scmp.lt.u32.totalorder %s3530_s28, %s4232_s5 }
   0x5   :  { %p3536_p2 = pnand %p3534_p1, %p3531_p0 }
   0x7   :  { %3539 = shalt.err (!%p3536_p2)
}
   0x8   :  { %s3540_s10 = scalar_lea.vmem %s30_s25, 1024  ;;  %p3545_p4 = scmp.lt.s32.totalorder %s30_s25, %s30_s25 }
   0x9   :  { %p3541_p3 = scmp.ne.s32.totalorder %s30_s25, %s3540_s10  ;;  %p3546_p5 = scmp.lt.s32.totalorder %s3540_s10, %s3540_s10 }
   0xb   :  { %p3547_p6 = por %p3546_p5, %p3545_p4 }
   0xd   :  { %p3548_p7 = pnand %p3547_p6, %p3541_p3 }
   0xf   :  { %3551 = shalt.err (!%p3548_p7)
}
  0x10   :  { %s3579_s11 = smov 64   ;;  %s3580_s12 = smov 4  }
  0x11   :  { %35 = dma.hbm_to_vmem [thread:$0]  %s4232_s5, 1024, %s30_s25, [#allocation3], %s3579_s11, %s3579_s11, %s3580_s12  }
  0x12   :  { %3574 = dma.done.wait [#allocation3], 1024  }
  0x13   :  { %3575 = vsyncadd [#allocation3], 4294966272  ;;  %vm52_vm0 = vcmask 64512   ;;  %v48_v0 = vld [vmem:[%s4229_s2] sm:$0xff]  ;;  %v51_v2 = vld [vmem:[%s4231_s4 + $0x8] sm:$0x1] }
  0x14   :  { %v50_v1 = vld [vmem:[%s4231_s4] sm:$0xff]  ;;  %v60_v3 = vand.u32 4294901760, %v48_v0  ;;  %v57_v5 = vsel %vm52_vm0, %v51_v2, 0  ;;  %v3581_v28 = vmov 2102212464   ;;  %s3590_s17 = smov [#allocation5]  }
  0x15   :  { %v54_v4 = vsel %vm52_vm0, %v50_v1, 0  ;;  %v3654_v7 = vand.u32 4294901760, %v57_v5  ;;  %v3693_v20 = vld [vmem:[%s4230_s3] sm:$0xff]  ;;  %v3582_v30 = vmov 920167782   ;;  %s2743_s18 = sshll.u32 %s3590_s17, 4  ;;  %s2744_s18 = int_to_ptr.vmem [resolvable:$true] %s2743_s18 }
  0x16   :  { %v3652_v6 = vand.u32 4294901760, %v54_v4  ;;  %2961 = vmatprep.subr.mxu0 %v60_v3  ;;  %v146_v8 = vsub.f32 %v48_v0, %v60_v3  ;;  %v551_v21 = vand.u32 2139095040, %v3693_v20  ;;  %v548_v32 = vand.u32 2147483647, %v3693_v20  ;;  %s3552_s4 = scalar_lea.vmem %s2744_s18, 16  ;;  %s3556_s5 = scalar_lea.vmem %s2744_s18, 32 }
  0x17   :  { %2962 = vmatpush3.msra.mxu0 %v60_v3  ;;  %v3660_v10 = vsub.f32 %v57_v5, %v3654_v7  ;;  %v3583_v35 = vmov 1326507024   ;;  %v3584_v37 = vmov 683565275   ;;  %v3585_v39 = vmov 2475754826   ;;  %p3553_p8 = scmp.ne.s32.totalorder %s2744_s18, %s3552_s4  ;;  %p3557_p9 = scmp.lt.s32.totalorder %s2744_s18, %s2744_s18 }
  0x18   :  { %v3657_v9 = vsub.f32 %v54_v4, %v3652_v6  ;;  %v147_v11 = vand.u32 4294901760, %v146_v8  ;;  %v552_v22 = vshrl.u32 %v551_v21, 23  ;;  %v3586_v42 = vmov 2131351028   ;;  %p3558_p10 = scmp.lt.s32.totalorder %s3556_s5, %s3552_s4 }
  0x19   :  { %v3666_v13 = vand.u32 4294901760, %v3660_v10  ;;  %v555_v47 = vand.u32 8388607, %v548_v32  ;;  %vm550_vm8 = vcmp.lt.s32.totalorder %v3693_v20, 0  ;;  %vm549_vm9 = vcmp.le.f32.partialorder %v548_v32, 0.7853982 }
  0x1a   :  { %v3663_v12 = vand.u32 4294901760, %v3657_v9  ;;  %3003 = vmatprep.mubr.f32.mxu1 %v3657_v9  ;;  %v148_v14 = vsub.f32 %v146_v8, %v147_v11  ;;  %v2753_v23 = vadd.s32 4294967169, %v552_v22  ;;  %vm640_vm0 = vweird.f32 %v3693_v20  ;;  %p3559_p11 = por %p3558_p10, %p3557_p9 }
  0x1b   :  { %v138_v16 = vsub.f32 %v3660_v10, %v3666_v13  ;;  %v556_v53 = vor.u32 8388608, %v555_v47 }
  0x1c   :  { %v128_v15 = vsub.f32 %v3657_v9, %v3663_v12  ;;  %v149_v17 = vand.u32 4294901760, %v148_v14  ;;  %v558_v24 = vadd.s32 1, %v2753_v23  ;;  %p3560_p12 = pnand %p3559_p11, %p3553_p8 }
  0x1d   :  { %v3675_v19 = vand.u32 4294901760, %v138_v16  ;;  %v596_v59 = vshll.u32 %v556_v53, 8 }
  0x1e   :  { %v3673_v18 = vand.u32 4294901760, %v128_v15  ;;  %2966 = vmatprep.subr.mxu0 %v149_v17  ;;  %vm559_vm1 = vcmp.gt.s32.totalorder %v558_v24, 0 }
  0x1f   :  { %v560_v25 = vsel %vm559_vm1, %v558_v24, 0 }
  0x20   :  { %2963 = vmatprep.mubr.f32.mxu0 %v3673_v18  ;;  %v562_v26 = vand.u32 31, %v560_v25  ;;  %v561_v33 = vshrl.u32 %v560_v25, 5 }
  0x21   :  { %2964 = vmatmul.mubr.f32.vlgmr.msra.gmra.mrb[0].mxu0 %v3675_v19 }
  0x22   :  { %2967 = vmatpush3.msra.mxu0 %v149_v17  ;;  %2968 = vmatprep.mubr.f32.mxu0 %v3652_v6  ;;  %v563_v27 = vsub.s32 32, %v562_v26  ;;  %v574_v29 = vshll.u32 %v3581_v28, %v562_v26  ;;  %v577_v34 = vshll.u32 %v3582_v30, %v562_v26  ;;  %v565_v38 = vshll.u32 %v3584_v37, %v562_v26 }
  0x23   :  { %2971 = vmatprep.subr.mxu0 %v146_v8  ;;  %v568_v41 = vshll.u32 %v3585_v39, %v562_v26  ;;  %v571_v44 = vshll.u32 %v3586_v42, %v562_v26  ;;  %vm583_vm2 = vcmp.lt.s32.totalorder %v561_v33, 4  ;;  %vm580_vm3 = vcmp.lt.s32.totalorder %v561_v33, 1 }
  0x24   :  { %v575_v31 = vshrl.u32 %v3582_v30, %v563_v27  ;;  %v578_v36 = vshrl.u32 %v3583_v35, %v563_v27  ;;  %v566_v40 = vshrl.u32 %v3585_v39, %v563_v27  ;;  %v569_v43 = vshrl.u32 %v3586_v42, %v563_v27 }
  0x25   :  { %v572_v45 = vshrl.u32 %v3581_v28, %v563_v27  ;;  %vm582_vm4 = vcmp.lt.s32.totalorder %v561_v33, 3  ;;  %vm581_vm5 = vcmp.lt.s32.totalorder %v561_v33, 2  ;;  %v564_v0 = vshrl.u32 %v3584_v37, %v563_v27 }
  0x26   :  { %v576_v46 = vor.u32 %v575_v31, %v574_v29  ;;  %v579_v48 = vor.u32 %v578_v36, %v577_v34  ;;  %v567_v49 = vor.u32 %v566_v40, %v565_v38  ;;  %v570_v50 = vor.u32 %v569_v43, %v568_v41 }
  0x27   :  { %v573_v51 = vor.u32 %v572_v45, %v571_v44 }
  0x28   :  { %v589_v52 = vsel %vm583_vm2, %v576_v46, 920167782  ;;  %v593_v54 = vsel %vm583_vm2, %v579_v48, 1326507024  ;;  %v588_v55 = vsel %vm580_vm3, %v567_v49, %v570_v50  ;;  %v584_v4 = vsel %vm580_vm3, %v564_v0, %v567_v49 }
  0x29   :  { %2969 = vmatmul.mubr.f32.vlgmr.msra.gmra.mrb[0].mxu0 %v3654_v7  ;;  %v590_v56 = vsel %vm582_vm4, %v573_v51, %v589_v52  ;;  %v592_v57 = vsel %vm580_vm3, %v570_v50, %v573_v51  ;;  %v594_v58 = vsel %vm582_vm4, %v576_v46, %v593_v54 }
  0x2a   :  { %2972 = vmatpush3.msra.mxu0 %v146_v8  ;;  %2973 = vmatprep.mubr.f32.mxu0 %v3657_v9  ;;  %v591_v60 = vsel %vm581_vm5, %v588_v55, %v590_v56  ;;  %v595_v61 = vsel %vm581_vm5, %v592_v57, %v594_v58 }
  0x2b   :  { %2976 = vmatprep.subr.mxu0 %v60_v3  ;;  %v3717_v62 = vmul.u32.u64.low %v596_v59, %v591_v60  ;;  %v3718_v63 = vmul.u32.u64.high %v596_v59, %v591_v60, %v3717_v62  ;;  %v3721_v1 = vmul.u32.u64.low %v596_v59, %v595_v61  ;;  %v3722_v2 = vmul.u32.u64.high %v596_v59, %v595_v61, %v3721_v1 }
  0x2d   :  { %vm605_vm6 = vc.u32 %v3722_v2, %v3717_v62  ;;  %v604_v33 = vadd.s32 %v3717_v62, %v3722_v2 }
  0x31   :  { %2974 = vmatmul.mubr.f32.vlgmr.msra.gmra.mrb[0].mxu0 %v3660_v10 }
  0x32   :  { %2977 = vmatpush3.msra.mxu0 %v60_v3  ;;  %2978 = vmatprep.mubr.f32.mxu0 %v3663_v12 }
  0x33   :  { %2981 = vmatprep.subr.mxu0 %v147_v11 }
  0x39   :  { %2979 = vmatmul.mubr.f32.vlgmr.msra.gmra.mrb[0].mxu0 %v3666_v13 }
  0x3a   :  { %2982 = vmatpush3.msra.mxu0 %v147_v11  ;;  %2983 = vmatprep.mubr.f32.mxu0 %v3652_v6  ;;  %v606_v11 = vadd.s32 1, %v3718_v63 }
  0x3b   :  { %2986 = vmatprep.subr.mxu0 %v60_v3 }
  0x3c   :  { %v607_v15 = vsel %vm605_vm6, %v606_v11, %v3718_v63 }
  0x41   :  { %2984 = vmatmul.mubr.f32.vlgmr.msra.gmra.mrb[0].mxu0 %v3654_v7 }
  0x42   :  { %2987 = vmatpush3.msra.mxu0 %v60_v3  ;;  %2988 = vmatprep.mubr.f32.mxu0 %v3652_v6  ;;  %v585_v3 = vsel %vm583_vm2, %v573_v51, 2102212464 }
  0x43   :  { %v586_v5 = vsel %vm582_vm4, %v570_v50, %v585_v3 }
  0x44   :  { %v587_v8 = vsel %vm581_vm5, %v584_v4, %v586_v5 }
  0x45   :  { %v603_v14 = vmul.u32 %v596_v59, %v587_v8  ;;  %v2752_v8 = vld [vmem:[%s4227_s0 + $0x3] ss:$0 sm:$0xff] }
  0x47   :  { %v608_v16 = vadd.s32 %v607_v15, %v603_v14 }
  0x49   :  { %2989 = vmatmul.mubr.f32.vlgmr.msra.gmra.mrb[0].mxu0 %v3654_v7  ;;  %v609_v17 = vadd.s32 536870912, %v608_v16 }
  0x4a   :  { %2993 = vmatprep.mubr.f32.mxu0 %v3673_v18 }
  0x4b   :  { %v610_v21 = vshrl.u32 %v609_v17, 30 }
  0x4d   :  { %v611_v22 = vshll.u32 %v610_v21, 30  ;;  %v634_v51 = vsub.s32 4, %v610_v21 }
  0x4f   :  { %v612_v23 = vsub.s32 %v608_v16, %v611_v22  ;;  %v635_v52 = vsel %vm550_vm8, %v634_v51, %v610_v21 }
  0x50   :  { %v637_v53 = vsel %vm549_vm9, 0, %v635_v52 }
  0x51   :  { %v614_v24 = vsub.s32 0, %v612_v23  ;;  %v641_v56 = vand.u32 3, %v637_v53  ;;  %v642_v61 = vadd.s32 3, %v637_v53 }
  0x53   :  { %v2754_v25 = vmin.u32 %v614_v24, %v612_v23  ;;  %vm645_vm10 = vcmp.eq.s32.totalorder %v641_v56, 0  ;;  %vm648_vm11 = vcmp.eq.s32.totalorder %v641_v56, 2  ;;  %vm644_vm12 = vcmp.lt.s32.totalorder %v641_v56, 2 }
  0x54   :  { %v643_v62 = vand.u32 3, %v642_v61 }
  0x55   :  { %v616_v26 = vclz %v2754_v25  ;;  %v3587_v25 = vmov 0.0  }
  0x56   :  { %vm653_vm13 = vcmp.eq.s32.totalorder %v643_v62, 0  ;;  %vm656_vm14 = vcmp.eq.s32.totalorder %v643_v62, 2  ;;  %vm652_vm15 = vcmp.lt.s32.totalorder %v643_v62, 2 }
  0x57   :  { %v2755_v27 = vadd.s32 4294967294, %v616_v26 }
  0x59   :  { %vm2756_vm7 = vcmp.lt.s32.totalorder %v2755_v27, 0 }
  0x5a   :  { %v619_v29 = vsel %vm2756_vm7, 0, %v2755_v27 }
  0x5b   :  { %v624_v31 = vsub.s32 4294967266, %v619_v29  ;;  %v620_v34 = vsub.s32 32, %v619_v29  ;;  %v621_v38 = vshll.u32 %v612_v23, %v619_v29  ;;  %v2757_v29 = vld [vmem:[%s4227_s0 + $0x2] ss:$0 sm:$0xff] }
  0x5d   :  { %v625_v36 = vadd.s32 127, %v624_v31  ;;  %v622_v40 = vshrl.u32 %v604_v33, %v620_v34 }
  0x5f   :  { %v626_v41 = vshll.u32 %v625_v36, 23  ;;  %v623_v43 = vor.u32 %v622_v40, %v621_v38 }
  0x61   :  { %v627_v44 = vor.u32 4788187, %v626_v41  ;;  %v630_v46 = vcvt.s32.f32 %v623_v43 }
  0x63   :  { %v628_v45 = vand.u32 2147483647, %v627_v44 }
  0x65   :  { %v631_v47 = vmul.f32 %v630_v46, %v628_v45 }
  0x67   :  { %v632_v48 = vxor.u32 2147483648, %v631_v47 }
  0x69   :  { %v633_v49 = vsel %vm550_vm8, %v632_v48, %v631_v47  ;;  %v3765_v47 = vld [vmem:[#allocation2] sm:$0xff]   ;;  %v3767_v48 = vld [vmem:[#allocation2 + $0x8] sm:$0xff]  }
  0x6a   :  { %v636_v50 = vsel %vm549_vm9, %v3693_v20, %v633_v49  ;;  %v3769_v49 = vld [vmem:[#allocation2 + $0x10] sm:$0xff]   ;;  %v2774_v51 = vunpack.c.l.bf16 %v3765_v47  ;;  %v2775_v52 = vunpack.c.h.bf16 %v3765_v47  ;;  %v2778_v53 = vunpack.c.l.bf16 %v3767_v48 }
  0x6b   :  { %3507 = vcosq.f32 %v636_v50 }
  0x6c   :  { %3509 = vsinq.f32 %v636_v50  ;;  %v3588_v50 = vmov 0.0|0.0   ;;  %v3782_v61 = vsub.f32 %v2775_v52, %v2775_v52 }
  0x75   :  { %v3508_v54 = vpop.eup %3507 }
  0x76   :  { %v3510_v55 = vpop.eup %3509  ;;  %v649_v58 = vxor.u32 2147483648, %v3508_v54 }
  0x77   :  { %v646_v57 = vxor.u32 2147483648, %v3510_v55 }
  0x78   :  { %v650_v60 = vsel %vm648_vm11, %v649_v58, %v3510_v55  ;;  %v658_v0 = vsel %vm656_vm14, %v649_v58, %v3510_v55  ;;  %v3776_v55 = vld [vmem:[#allocation2 + $0x18] sm:$0xff]   ;;  %v2782_v58 = vunpack.c.l.bf16 %v3769_v49 }
  0x79   :  { %v647_v59 = vsel %vm645_vm10, %v3508_v54, %v646_v57  ;;  %v655_v63 = vsel %vm653_vm13, %v3508_v54, %v646_v57  ;;  %v2779_v54 = vunpack.c.h.bf16 %v3767_v48 }
  0x7a   :  { %v651_v32 = vsel %vm644_vm12, %v647_v59, %v650_v60  ;;  %v659_v2 = vsel %vm652_vm15, %v655_v63, %v658_v0  ;;  %v2783_v59 = vunpack.c.h.bf16 %v3769_v49  ;;  %v3780_v60 = vsub.f32 %v2774_v51, %v2774_v51 }
  0x7b   :  { %3511 = vrcp.f32 %v651_v32  ;;  %v3784_v32 = vsub.f32 %v2778_v53, %v2778_v53  ;;  %v3786_v62 = vsub.f32 %v2779_v54, %v2779_v54  ;;  %v3788_v63 = vsub.f32 %v2782_v58, %v2782_v58 }
  0x7c   :  { %v3790_v0 = vsub.f32 %v2783_v59, %v2783_v59 }
  0x85   :  { %v3512_v1 = vpop.eup %3511 }
  0x86   :  { %v661_v3 = vmul.f32 %v3512_v1, %v659_v2  ;;  %v2786_v1 = vunpack.c.l.bf16 %v3776_v55 }
  0x88   :  { %v662_v4 = vsel %vm640_vm0, nan, %v661_v3  ;;  %v3316_v3 = vpack.c.bf16 %v3782_v61, %v3780_v60 }
  0x89   :  { %v663_v15 = vmul.f32 0.1, %v662_v4  ;;  %v2787_v4 = vunpack.c.h.bf16 %v3776_v55 }
 0x11c   :  { %v2990_v5 = vpop.f32.mrb[0].mxu0 }
 0x11d   :  { %v533_v11 = vpop.f32.mrb[1].mxu0  ;;  %v3796_v5 = vld [vmem:[#allocation2 + $0x20] sm:$0xff]  }
 0x11e   :  { %v542_v14 = vmul.f32 0.2, %v533_v11 }
 0x120   :  { %v3740_v16 = vadd.f32 %v2752_v8, %v542_v14 }
 0x122   :  { %v664_v17 = vmul.f32 %v663_v15, %v3740_v16  ;;  %v3319_v15 = vpack.c.bf16 %v3786_v62, %v3784_v32 }
 0x124   :  { %v666_v21 = vand.u32 4294901760, %v664_v17 }
 0x126   :  { %2991 = vmatprep.subr.mxu0 %v666_v21  ;;  %v753_v22 = vsub.f32 %v664_v17, %v666_v21  ;;  %v3322_v17 = vpack.c.bf16 %v3790_v0, %v3788_v63 }
 0x127   :  { %2992 = vmatpush3.msra.mxu0 %v666_v21 }
 0x128   :  { %3001 = vmatprep.subr.mxu1 %v753_v22  ;;  %v754_v23 = vand.u32 4294901760, %v753_v22  ;;  %2994 = vmatmul.mubr.f32.vlgmr.msra.gmra.mrb[2].mxu0 %v3675_v19 }
 0x129   :  { %3002 = vmatpush3.msra.mxu1 %v753_v22  ;;  %2998 = vmatprep.mubr.f32.mxu0 %v3652_v6 }
 0x12a   :  { %3004 = vmatmul.mubr.f32.vlgmr.msra.gmra.mrb[0].mxu1 %v3660_v10  ;;  %3006 = vmatprep.subr.mxu1 %v666_v21  ;;  %v755_v20 = vsub.f32 %v753_v22, %v754_v23 }
 0x12b   :  { %3007 = vmatpush3.msra.mxu1 %v666_v21  ;;  %3008 = vmatprep.mubr.f32.mxu1 %v3663_v12 }
 0x12c   :  { %3011 = vmatprep.subr.mxu1 %v754_v23  ;;  %v756_v24 = vand.u32 4294901760, %v755_v20  ;;  %v2790_v20 = vunpack.c.l.bf16 %v3796_v5 }
 0x12e   :  { %2996 = vmatprep.subr.mxu0 %v756_v24  ;;  %v3829_v58 = vsub.f32 %v2790_v20, %v2790_v20 }
 0x12f   :  { %2997 = vmatpush3.msra.mxu0 %v756_v24  ;;  %v2791_v24 = vunpack.c.h.bf16 %v3796_v5 }
 0x130   :  { %2999 = vmatmul.mubr.f32.vlgmr.msra.gmra.mrb[2].mxu0 %v3654_v7 }
 0x131   :  { %1435 = vmatprep.mubr.f32.mxu0 %v3587_v25  ;;  %v3831_v59 = vsub.f32 %v2791_v24, %v2791_v24 }
 0x132   :  { %3009 = vmatmul.mubr.f32.vlgmr.msra.gmra.mrb[0].mxu1 %v3666_v13 }
 0x133   :  { %3012 = vmatpush3.msra.mxu1 %v754_v23  ;;  %3013 = vmatprep.mubr.f32.mxu1 %v3652_v6  ;;  %v3807_v23 = vsub.f32 %v2787_v4, %v2787_v4 }
 0x134   :  { %3016 = vmatprep.subr.mxu1 %v666_v21 }
 0x13a   :  { %3014 = vmatmul.mubr.f32.vlgmr.msra.gmra.mrb[0].mxu1 %v3654_v7 }
 0x13b   :  { %3017 = vmatpush3.msra.mxu1 %v666_v21  ;;  %3018 = vmatprep.mubr.f32.mxu1 %v3652_v6  ;;  %v3804_v21 = vsub.f32 %v2786_v1, %v2786_v1 }
 0x13c   :  { %3315 = vmatprep.subr.bf16.mxu1 %v3588_v50 }
 0x142   :  { %3019 = vmatmul.mubr.f32.vlgmr.msra.gmra.mrb[0].mxu1 %v3654_v7 }
 0x143   :  { %3317 = vmatpush3.bf16.msra.mxu1 %v3316_v3 }
 0x144   :  { %3318 = vmatprep.subr.bf16.mxu1 %v3588_v50 }
 0x147   :  { %3320 = vmatpush3.bf16.msra.mxu1 %v3319_v15 }
 0x148   :  { %3321 = vmatprep.subr.bf16.mxu1 %v3588_v50 }
 0x14b   :  { %3323 = vmatpush3.bf16.msra.mxu1 %v3322_v17 }
 0x14c   :  { %3324 = vmatprep.subr.bf16.mxu1 %v3588_v50 }
 0x203   :  { %v3000_v26 = vpop.f32.mrb[2].mxu0 }
 0x204   :  { %v823_v27 = vpop.f32.mrb[3].mxu0 }
 0x215   :  { %v3020_v31 = vpop.f32.mrb[0].mxu1 }
 0x216   :  { %v3411_v33 = vadd.f32 %v3020_v31, %v3000_v26  ;;  %v1144_v34 = vpop.f32.mrb[1].mxu1 }
 0x217   :  { %v3412_v36 = vadd.f32 %v1144_v34, %v823_v27 }
 0x218   :  { %v3757_v38 = vadd.f32 %v3411_v33, %v2757_v29 }
 0x219   :  { %v3759_v40 = vadd.f32 %v3412_v36, %v2757_v29 }
 0x21b   :  { %v1160_v41 = vand.u32 2147483647, %v3759_v40  ;;  %v1163_v43 = vand.u32 2139095040, %v3759_v40  ;;  %vm1162_vm8 = vcmp.lt.s32.totalorder %v3759_v40, 0  ;;  %vm1252_vm0 = vweird.f32 %v3759_v40 }
 0x21d   :  { %v1164_v44 = vshrl.u32 %v1163_v43, 23  ;;  %v1167_v45 = vand.u32 8388607, %v1160_v41  ;;  %vm1161_vm9 = vcmp.le.f32.partialorder %v1160_v41, 0.7853982 }
 0x21f   :  { %v2758_v46 = vadd.s32 4294967169, %v1164_v44  ;;  %v1168_v56 = vor.u32 8388608, %v1167_v45 }
 0x221   :  { %v1170_v57 = vadd.s32 1, %v2758_v46  ;;  %v3798_v11 = vshll.u32 %v1168_v56, 8  ;;  %v3325_v56 = vpack.c.bf16 %v3807_v23, %v3804_v21 }
 0x223   :  { %vm1171_vm1 = vcmp.gt.s32.totalorder %v1170_v57, 0  ;;  %3326 = vmatpush3.bf16.msra.mxu1 %v3325_v56 }
 0x224   :  { %v1172_v2 = vsel %vm1171_vm1, %v1170_v57, 0  ;;  %3327 = vmatprep.subr.bf16.mxu1 %v3588_v50  ;;  %vm3589_vm1 = vmmov 0  }
 0x225   :  { %v1174_v8 = vand.u32 31, %v1172_v2  ;;  %v1173_v14 = vshrl.u32 %v1172_v2, 5  ;;  %3135 = vmatprep.mubr.msk.f32.mxu1 %vm3589_vm1, %v3587_v25 }
 0x227   :  { %v1175_v22 = vsub.s32 32, %v1174_v8  ;;  %v1177_v26 = vshll.u32 %v3584_v37, %v1174_v8  ;;  %v1180_v27 = vshll.u32 %v3585_v39, %v1174_v8  ;;  %v1183_v29 = vshll.u32 %v3586_v42, %v1174_v8 }
 0x228   :  { %v1186_v31 = vshll.u32 %v3581_v28, %v1174_v8  ;;  %v1189_v43 = vshll.u32 %v3582_v30, %v1174_v8  ;;  %vm1192_vm2 = vcmp.lt.s32.totalorder %v1173_v14, 1  ;;  %vm1193_vm3 = vcmp.lt.s32.totalorder %v1173_v14, 2 }
 0x229   :  { %v1178_v33 = vshrl.u32 %v3585_v39, %v1175_v22  ;;  %v1181_v34 = vshrl.u32 %v3586_v42, %v1175_v22  ;;  %v1184_v36 = vshrl.u32 %v3581_v28, %v1175_v22  ;;  %v1187_v44 = vshrl.u32 %v3582_v30, %v1175_v22  ;;  %v3823_v28 = vld [vmem:[#allocation2 + $0x28] sm:$0xff]  }
 0x22a   :  { %v1190_v45 = vshrl.u32 %v3583_v35, %v1175_v22  ;;  %v1176_v46 = vshrl.u32 %v3584_v37, %v1175_v22  ;;  %vm1194_vm4 = vcmp.lt.s32.totalorder %v1173_v14, 3  ;;  %vm1195_vm5 = vcmp.lt.s32.totalorder %v1173_v14, 4 }
 0x22b   :  { %v1179_v51 = vor.u32 %v1178_v33, %v1177_v26  ;;  %v1182_v52 = vor.u32 %v1181_v34, %v1180_v27  ;;  %v1185_v53 = vor.u32 %v1184_v36, %v1183_v29  ;;  %v1188_v39 = vor.u32 %v1187_v44, %v1186_v31 }
 0x22c   :  { %v1191_v42 = vor.u32 %v1190_v45, %v1189_v43  ;;  %v2794_v4 = vunpack.c.l.bf16 %v3823_v28  ;;  %v2795_v22 = vunpack.c.h.bf16 %v3823_v28  ;;  %v3328_v29 = vpack.c.bf16 %v3831_v59, %v3829_v58 }
 0x22d   :  { %v1197_v54 = vsel %vm1195_vm5, %v1185_v53, 2102212464  ;;  %v1200_v30 = vsel %vm1192_vm2, %v1179_v51, %v1182_v52  ;;  %v1204_v35 = vsel %vm1192_vm2, %v1182_v52, %v1185_v53  ;;  %v1201_v37 = vsel %vm1195_vm5, %v1188_v39, 920167782 }
 0x22e   :  { %v1205_v57 = vsel %vm1195_vm5, %v1191_v42, 1326507024  ;;  %v1196_v1 = vsel %vm1192_vm2, %v1176_v46, %v1179_v51  ;;  %v1202_v2 = vsel %vm1194_vm4, %v1185_v53, %v1201_v37  ;;  %v1198_v8 = vsel %vm1194_vm4, %v1182_v52, %v1197_v54  ;;  %3329 = vmatpush3.bf16.msra.mxu1 %v3328_v29 }
 0x22f   :  { %v1206_v3 = vsel %vm1194_vm4, %v1188_v39, %v1205_v57  ;;  %v1203_v15 = vsel %vm1193_vm3, %v1200_v30, %v1202_v2  ;;  %v3852_v31 = vsub.f32 %v2794_v4, %v2794_v4  ;;  %v3854_v33 = vsub.f32 %v2795_v22, %v2795_v22  ;;  %3330 = vmatprep.subr.bf16.mxu1 %v3588_v50 }
 0x230   :  { %v1207_v17 = vsel %vm1193_vm3, %v1204_v35, %v1206_v3  ;;  %v3847_v26 = vmul.u32.u64.low %v3798_v11, %v1203_v15  ;;  %v3848_v27 = vmul.u32.u64.high %v3798_v11, %v1203_v15, %v3847_v26  ;;  %v1199_v34 = vsel %vm1193_vm3, %v1196_v1, %v1198_v8 }
 0x231   :  { %v3843_v20 = vmul.u32.u64.low %v3798_v11, %v1207_v17  ;;  %v3844_v24 = vmul.u32.u64.high %v3798_v11, %v1207_v17, %v3843_v20  ;;  %v1215_v43 = vmul.u32 %v3798_v11, %v1199_v34  ;;  %v3331_v44 = vpack.c.bf16 %v3854_v33, %v3852_v31 }
 0x232   :  { %v1218_v36 = vadd.s32 1, %v3848_v27  ;;  %vm1945_vm2 = vcmask 1040384   ;;  %vm2633_vm3 = vcmask 1046528  }
 0x233   :  { %vm1217_vm6 = vc.u32 %v3844_v24, %v3847_v26  ;;  %3332 = vmatpush3.bf16.msra.mxu1 %v3331_v44  ;;  %v1216_v35 = vadd.s32 %v3847_v26, %v3844_v24 }
 0x234   :  { %v1219_v45 = vsel %vm1217_vm6, %v1218_v36, %v3848_v27  ;;  %3333 = vmatprep.subr.bf16.mxu1 %v3588_v50 }
 0x235   :  { %v1220_v46 = vadd.s32 %v1219_v45, %v1215_v43 }
 0x237   :  { %v1221_v51 = vadd.s32 536870912, %v1220_v46 }
 0x239   :  { %v1222_v14 = vshrl.u32 %v1221_v51, 30 }
 0x23b   :  { %v1223_v52 = vshll.u32 %v1222_v14, 30  ;;  %v1246_v20 = vsub.s32 4, %v1222_v14 }
 0x23d   :  { %v1224_v53 = vsub.s32 %v1220_v46, %v1223_v52  ;;  %v1247_v24 = vsel %vm1162_vm8, %v1246_v20, %v1222_v14 }
 0x23e   :  { %v1249_v34 = vsel %vm1161_vm9, 0, %v1247_v24 }
 0x23f   :  { %v1226_v39 = vsub.s32 0, %v1224_v53  ;;  %v1357_v36 = vadd.s32 3, %v1249_v34  ;;  %v1253_v44 = vand.u32 3, %v1249_v34 }
 0x241   :  { %v2759_v42 = vmin.u32 %v1226_v39, %v1224_v53  ;;  %v1358_v43 = vand.u32 3, %v1357_v36  ;;  %vm1258_vm11 = vcmp.eq.s32.totalorder %v1253_v44, 2  ;;  %vm1255_vm13 = vcmp.eq.s32.totalorder %v1253_v44, 0 }
 0x242   :  { %vm1254_vm15 = vcmp.lt.s32.totalorder %v1253_v44, 2 }
 0x243   :  { %v1228_v54 = vclz %v2759_v42  ;;  %vm1363_vm10 = vcmp.eq.s32.totalorder %v1358_v43, 2  ;;  %vm1360_vm12 = vcmp.eq.s32.totalorder %v1358_v43, 0  ;;  %vm1359_vm14 = vcmp.lt.s32.totalorder %v1358_v43, 2 }
 0x245   :  { %v2760_v11 = vadd.s32 4294967294, %v1228_v54 }
 0x247   :  { %vm2761_vm7 = vcmp.lt.s32.totalorder %v2760_v11, 0 }
 0x248   :  { %v1231_v30 = vsel %vm2761_vm7, 0, %v2760_v11 }
 0x249   :  { %v1232_v56 = vsub.s32 32, %v1231_v30  ;;  %v1236_v37 = vsub.s32 4294967266, %v1231_v30  ;;  %v1233_v57 = vshll.u32 %v1224_v53, %v1231_v30 }
 0x24b   :  { %v1234_v1 = vshrl.u32 %v1216_v35, %v1232_v56  ;;  %v1237_v2 = vadd.s32 127, %v1236_v37 }
 0x24d   :  { %v1235_v3 = vor.u32 %v1234_v1, %v1233_v57  ;;  %v1238_v4 = vshll.u32 %v1237_v2, 23 }
 0x24f   :  { %v1239_v8 = vor.u32 4788187, %v1238_v4  ;;  %v1242_v17 = vcvt.s32.f32 %v1235_v3 }
 0x251   :  { %v1240_v15 = vand.u32 2147483647, %v1239_v8 }
 0x253   :  { %v1243_v22 = vmul.f32 %v1242_v17, %v1240_v15 }
 0x255   :  { %v1244_v27 = vxor.u32 2147483648, %v1243_v22 }
 0x257   :  { %v1245_v29 = vsel %vm1162_vm8, %v1244_v27, %v1243_v22 }
 0x258   :  { %v1248_v26 = vsel %vm1161_vm9, %v3759_v40, %v1245_v29 }
 0x259   :  { %3513 = vcosq.f32 %v1248_v26 }
 0x25a   :  { %3515 = vsinq.f32 %v1248_v26 }
 0x263   :  { %v3514_v45 = vpop.eup %3513 }
 0x264   :  { %v3516_v46 = vpop.eup %3515  ;;  %v1259_v51 = vxor.u32 2147483648, %v3514_v45 }
 0x265   :  { %v1256_v52 = vxor.u32 2147483648, %v3516_v46 }
 0x266   :  { %v1365_v53 = vsel %vm1363_vm10, %v1259_v51, %v3516_v46  ;;  %v1260_v41 = vsel %vm1258_vm11, %v1259_v51, %v3516_v46 }
 0x267   :  { %v1362_v14 = vsel %vm1360_vm12, %v3514_v45, %v1256_v52  ;;  %v1257_v39 = vsel %vm1255_vm13, %v3514_v45, %v1256_v52 }
 0x268   :  { %v1366_v42 = vsel %vm1359_vm14, %v1362_v14, %v1365_v53  ;;  %v1261_v54 = vsel %vm1254_vm15, %v1257_v39, %v1260_v41  ;;  %vm2735_vm14 = vcmask 0  }
 0x269   :  { %v1367_v11 = vsel %vm1252_vm0, nan, %v1366_v42  ;;  %v1262_v30 = vsel %vm1252_vm0, nan, %v1261_v54 }
 0x26a   :  { %v1368_v35 = vmul.f32 %v1367_v11, %v3740_v16  ;;  %v1263_v56 = vmul.f32 %v1262_v30, %v3740_v16  ;;  %v4240_v11 = vand.u32 4294901760, %v3780_v60  ;;  %v4239_v30 = vand.u32 4294901760, %v3782_v61 }
 0x26c   :  { %v1369_v37 = vand.u32 4294901760, %v1368_v35  ;;  %v1371_v57 = vand.u32 4294901760, %v1263_v56 }
 0x26e   :  { %1370 = vmatprep.subr.mxu0 %v1369_v37  ;;  %v1465_v1 = vsub.f32 %v1263_v56, %v1371_v57  ;;  %v1459_v2 = vsub.f32 %v1368_v35, %v1369_v37  ;;  %v4238_v35 = vand.u32 4294901760, %v3784_v32  ;;  %v4237_v56 = vand.u32 4294901760, %v3786_v62 }
 0x26f   :  { %1372 = vmatpush1.msra.mxu0 %v1371_v57 }
 0x270   :  { %1441 = vmatmul.mubr.f32.vlgmr.msra.gmra.mrb[4].mxu0 %v3673_v18  ;;  %v1460_v3 = vand.u32 4294901760, %v1459_v2  ;;  %v1466_v4 = vand.u32 4294901760, %v1465_v1 }
 0x271   :  { %1446 = vmatprep.mubr.f32.mxu0 %v3587_v25 }
 0x272   :  { %v1461_v8 = vsub.f32 %v1459_v2, %v1460_v3  ;;  %v1467_v15 = vsub.f32 %v1465_v1, %v1466_v4 }
 0x274   :  { %1452 = vmatmul.mubr.f32.gmra.mrb[6].mxu0 %v3675_v19  ;;  %v1462_v17 = vand.u32 4294901760, %v1461_v8  ;;  %v1468_v22 = vand.u32 4294901760, %v1467_v15 }
 0x275   :  { %1532 = vmatprep.mubr.f32.mxu0 %v3587_v25 }
 0x276   :  { %1463 = vmatprep.subr.mxu0 %v1462_v17 }
 0x277   :  { %1469 = vmatpush1.msra.mxu0 %v1468_v22  ;;  %v4236_v22 = vand.u32 4294901760, %v3788_v63 }
 0x278   :  { %1534 = vmatmul.mubr.f32.vlgmr.msra.gmra.mrb[4].mxu0 %v3652_v6  ;;  %1549 = vmatprep.subr.mxu0 %v1459_v2  ;;  %v2113_v2 = vsub.f32 %v3786_v62, %v4237_v56 }
 0x279   :  { %1552 = vmatpush1.msra.mxu0 %v1465_v1  ;;  %1539 = vmatprep.mubr.f32.mxu0 %v3587_v25  ;;  %v2107_v1 = vsub.f32 %v3784_v32, %v4238_v35 }
 0x27a   :  { %1633 = vmatprep.subr.mxu0 %v1369_v37  ;;  %v2114_v17 = vand.u32 4294901760, %v2113_v2 }
 0x27b   :  { %v2108_v15 = vand.u32 4294901760, %v2107_v1 }
 0x27c   :  { %1541 = vmatmul.mubr.f32.gmra.mrb[6].mxu0 %v3654_v7 }
 0x27d   :  { %1615 = vmatprep.mubr.f32.mxu0 %v3587_v25 }
 0x280   :  { %1618 = vmatmul.mubr.f32.vlgmr.msra.gmra.mrb[4].mxu0 %v3657_v9 }
 0x281   :  { %1635 = vmatpush1.msra.mxu0 %v1371_v57  ;;  %1623 = vmatprep.mubr.f32.mxu0 %v3587_v25 }
 0x282   :  { %1720 = vmatprep.subr.mxu0 %v1460_v3 }
 0x284   :  { %1626 = vmatmul.mubr.f32.gmra.mrb[6].mxu0 %v3660_v10 }
 0x285   :  { %1698 = vmatprep.mubr.f32.mxu0 %v3587_v25 }
 0x288   :  { %1702 = vmatmul.mubr.f32.vlgmr.msra.gmra.mrb[4].mxu0 %v3663_v12 }
 0x289   :  { %1724 = vmatpush1.msra.mxu0 %v1466_v4  ;;  %1707 = vmatprep.mubr.f32.mxu0 %v3587_v25  ;;  %v3955_v4 = vld [vmem:[%s4228_s1 + $0x2] ss:$0 sm:$0xff] }
 0x28a   :  { %1803 = vmatprep.subr.mxu0 %v1369_v37  ;;  %v2095_v37 = vsub.f32 %v3780_v60, %v4240_v11 }
 0x28c   :  { %1711 = vmatmul.mubr.f32.gmra.mrb[6].mxu0 %v3666_v13  ;;  %v3916_v13 = vld [vmem:[#allocation2 + $0x38] sm:$0xff]   ;;  %v2096_v3 = vand.u32 4294901760, %v2095_v37 }
 0x28d   :  { %1787 = vmatprep.mubr.f32.mxu0 %v3587_v25  ;;  %v2802_v19 = vunpack.c.l.bf16 %v3916_v13  ;;  %v2803_v16 = vunpack.c.h.bf16 %v3916_v13 }
 0x28f   :  { %v2177_v20 = vsub.f32 %v2802_v19, %v2802_v19  ;;  %v2183_v27 = vsub.f32 %v2803_v16, %v2803_v16 }
 0x290   :  { %1789 = vmatmul.mubr.f32.vlgmr.msra.gmra.mrb[4].mxu0 %v3652_v6 }
 0x291   :  { %1805 = vmatpush1.msra.mxu0 %v1371_v57  ;;  %1794 = vmatprep.mubr.f32.mxu0 %v3587_v25  ;;  %v3337_v29 = vpack.c.bf16 %v2183_v27, %v2177_v20  ;;  %v2178_v45 = vand.u32 4294901760, %v2177_v20  ;;  %v2184_v46 = vand.u32 4294901760, %v2183_v27  ;;  %v2101_v57 = vsub.f32 %v3782_v61, %v4239_v30 }
 0x292   :  { %3267 = vmatprep.subr.bf16.mxu0 %v3588_v50 }
 0x293   :  { %v2179_v52 = vsub.f32 %v2177_v20, %v2178_v45  ;;  %v2185_v53 = vsub.f32 %v2183_v27, %v2184_v46  ;;  %v3934_v54 = vpack.c.bf16 %v2184_v46, %v2178_v45  ;;  %v2102_v8 = vand.u32 4294901760, %v2101_v57  ;;  %v2768_v20 = vld [vmem:[%s4228_s1] ss:$0 sm:$0xff] }
 0x294   :  { %1796 = vmatmul.mubr.f32.gmra.mrb[6].mxu0 %v3654_v7  ;;  %v1937_v27 = vsub.f32 %v3759_v40, %v3955_v4  ;;  %v2130_v46 = vand.u32 4294901760, %v3804_v21 }
 0x295   :  { %1868 = vmatprep.mubr.f32.mxu0 %v3587_v25  ;;  %v2180_v41 = vand.u32 4294901760, %v2179_v52  ;;  %v2186_v14 = vand.u32 4294901760, %v2185_v53  ;;  %v2136_v52 = vand.u32 4294901760, %v3807_v23 }
 0x297   :  { %v3930_v39 = vpack.c.bf16 %v2186_v14, %v2180_v41 }
 0x298   :  { %1870 = vmatmul.mubr.f32.vlgmr.msra.gmra.mrb[4].mxu0 %v3652_v6  ;;  %v3910_v6 = vld [vmem:[#allocation2 + $0x30] sm:$0xff]  }
 0x299   :  { %1875 = vmatprep.mubr.f32.mxu0 %v3587_v25  ;;  %3269 = vmatpush3.bf16.msra.mxu0 %v3765_v47  ;;  %v2799_v9 = vunpack.c.h.bf16 %v3910_v6 }
 0x29a   :  { %3270 = vmatprep.subr.bf16.mxu0 %v3588_v50 }
 0x29b   :  { %v2171_v12 = vsub.f32 %v2799_v9, %v2799_v9 }
 0x29c   :  { %1877 = vmatmul.mubr.f32.gmra.mrb[6].mxu0 %v3654_v7  ;;  %v2798_v7 = vunpack.c.l.bf16 %v3910_v6 }
 0x29d   :  { %3272 = vmatpush3.bf16.msra.mxu0 %v3767_v48  ;;  %3053 = vmatprep.mubr.msk.f32.mxu0 %vm3589_vm1, %v3587_v25  ;;  %v2172_v26 = vand.u32 4294901760, %v2171_v12 }
 0x29e   :  { %3273 = vmatprep.subr.bf16.mxu0 %v3588_v50  ;;  %v2165_v10 = vsub.f32 %v2798_v7, %v2798_v7  ;;  %v2766_v7 = vld [vmem:[%s4227_s0] ss:$0 sm:$0xff] }
 0x29f   :  { %v2173_v36 = vsub.f32 %v2171_v12, %v2172_v26 }
 0x2a0   :  { %v3334_v18 = vpack.c.bf16 %v2171_v12, %v2165_v10  ;;  %v2166_v24 = vand.u32 4294901760, %v2165_v10 }
 0x2a1   :  { %3275 = vmatpush3.bf16.msra.mxu0 %v3769_v49  ;;  %v2174_v44 = vand.u32 4294901760, %v2173_v36  ;;  %v3978_v36 = vsub.f32 %v3788_v63, %v4236_v22  ;;  %v4241_v22 = vand.u32 4294901760, %v3831_v59 }
 0x2a2   :  { %3276 = vmatprep.subr.bf16.mxu0 %v3588_v50  ;;  %3335 = vmatpush3.bf16.msra.mxu1 %v3334_v18  ;;  %v2167_v34 = vsub.f32 %v2165_v10, %v2166_v24  ;;  %v3932_v42 = vpack.c.bf16 %v2172_v26, %v2166_v24  ;;  %v4235_v10 = vand.u32 4294901760, %v3790_v0  ;;  %v2767_v18 = vld [vmem:[%s4227_s0 + $0x1] ss:$0 sm:$0xff]  ;;  %v3292_v26 = vpack.c.bf16 %v2102_v8, %v2096_v3 }
 0x2a3   :  { %3336 = vmatprep.subr.bf16.mxu1 %v3588_v50  ;;  %v2769_v24 = vld [vmem:[%s4228_s1 + $0x1] ss:$0 sm:$0xff]  ;;  %v4242_v8 = vand.u32 4294901760, %v3829_v58 }
 0x2a4   :  { %v2168_v43 = vand.u32 4294901760, %v2167_v34  ;;  %v3973_v34 = vpack.c.bf16 %v2114_v17, %v2108_v15  ;;  %v3983_v45 = vsub.f32 %v3790_v0, %v4235_v10 }
 0x2a5   :  { %3278 = vmatpush3.bf16.msra.mxu0 %v3776_v55 }
 0x2a6   :  { %3279 = vmatprep.subr.bf16.mxu0 %v3588_v50  ;;  %3338 = vmatpush3.bf16.msra.mxu1 %v3337_v29  ;;  %v3928_v51 = vpack.c.bf16 %v2174_v44, %v2168_v43 }
 0x2a7   :  { %3339 = vmatprep.subr.bf16.mxu1 %v3588_v50 }
 0x2a9   :  { %3281 = vmatpush3.bf16.msra.mxu0 %v3796_v5 }
 0x2aa   :  { %3282 = vmatprep.subr.bf16.mxu0 %v3588_v50 }
 0x2ad   :  { %3284 = vmatpush3.bf16.msra.mxu0 %v3823_v28 }
 0x2ae   :  { %3285 = vmatprep.subr.bf16.mxu0 %v3588_v50 }
 0x2b1   :  { %3287 = vmatpush3.bf16.msra.mxu0 %v3910_v6 }
 0x2b2   :  { %3288 = vmatprep.subr.bf16.mxu0 %v3588_v50 }
 0x2b5   :  { %3290 = vmatpush3.bf16.msra.mxu0 %v3916_v13 }
 0x2b6   :  { %3291 = vmatprep.subr.bf16.mxu0 %v3588_v50 }
 0x36b   :  { %v1871_v9 = vpop.f32.mrb[4].mxu0 }
 0x36c   :  { %v1883_v12 = vmul.f32 0.2, %v1871_v9  ;;  %v1873_v19 = vpop.f32.mrb[5].mxu0 }
 0x36d   :  { %v1884_v16 = vmul.f32 0.2, %v1873_v19 }
 0x36e   :  { %v1895_v29 = vadd.f32 %v2766_v7, %v1883_v12 }
 0x36f   :  { %v1896_v43 = vadd.f32 %v2767_v18, %v1884_v16  ;;  %v1878_v44 = vpop.f32.mrb[6].mxu0 }
 0x370   :  { %v3987_v53 = vand.u32 4294901760, %v1895_v29  ;;  %v1885_v41 = vmul.f32 0.2, %v1878_v44  ;;  %v1903_v14 = vsub.f32 %v1895_v29, %v2768_v20  ;;  %v2671_v37 = vrot.slane %v1895_v29, 7  ;;  %v1880_v57 = vpop.f32.mrb[7].mxu0 }
 0x371   :  { %v1909_v1 = vsub.f32 %v1896_v43, %v2769_v24  ;;  %v1991_v2 = vrot.slane %v1896_v43, 7  ;;  %v1886_v3 = vmul.f32 0.2, %v1880_v57 }
 0x372   :  { %v1897_v15 = vadd.f32 %v2766_v7, %v1885_v41  ;;  %v1911_v17 = vmul.f32 %v1903_v14, %v1903_v14  ;;  %v2673_v9 = vsub.f32 %v1895_v29, %v2671_v37  ;;  %v3991_v12 = vsub.f32 %v1895_v29, %v3987_v53 }
 0x373   :  { %v1913_v19 = vmul.f32 %v1909_v1, %v1909_v1  ;;  %v2675_v16 = vsub.f32 %v1896_v43, %v1991_v2  ;;  %v1898_v10 = vadd.f32 %v2767_v18, %v1886_v3 }
 0x374   :  { %v1904_v44 = vsub.f32 %v1897_v15, %v2768_v20  ;;  %v2674_v56 = vsub.f32 %v1897_v15, %v2671_v37  ;;  %v2677_v35 = vmul.f32 %v2673_v9, %v2673_v9  ;;  %v2064_v30 = vand.u32 4294901760, %v3991_v12  ;;  %3136 = vmatmul.mubr.f32.vlgmr.msra.gmra.mrb[2].mxu1 %v3991_v12 }
 0x375   :  { %v2679_v57 = vmul.f32 %v2675_v16, %v2675_v16  ;;  %v3996_v11 = vadd.f32 %v1913_v19, %v1911_v17  ;;  %v1910_v7 = vsub.f32 %v1898_v10, %v2769_v24  ;;  %v1992_v41 = vrot.slane %v1898_v10, 7  ;;  %3341 = vmatpush3.bf16.msra.mxu1 %v3765_v47  ;;  %3138 = vmatprep.mubr.msk.f32.mxu1 %vm3589_vm1, %v3587_v25 }
 0x376   :  { %v1912_v18 = vmul.f32 %v1904_v44, %v1904_v44  ;;  %v2678_v29 = vmul.f32 %v2674_v56, %v2674_v56  ;;  %v2676_v43 = vsub.f32 %v1898_v10, %v1991_v2  ;;  %v2065_v20 = vsub.f32 %v3991_v12, %v2064_v30  ;;  %3342 = vmatprep.subr.bf16.mxu1 %v3588_v50 }
 0x377   :  { %v4005_v14 = vadd.f32 %v2679_v57, %v2677_v35  ;;  %v1914_v37 = vmul.f32 %v1910_v7, %v1910_v7  ;;  %v1996_v24 = vsel %vm1945_vm2, %v1897_v15, %v1991_v2  ;;  %v1993_v1 = vsel %vm1945_vm2, %v1991_v2, %v1992_v41 }
 0x378   :  { %v2680_v3 = vmul.f32 %v2676_v43, %v2676_v43  ;;  %v4009_v17 = vand.u32 4294901760, %v1996_v24  ;;  %v2066_v9 = vand.u32 4294901760, %v2065_v20  ;;  %v4011_v19 = vand.u32 4294901760, %v1993_v1 }
 0x379   :  { %v4013_v56 = vadd.f32 %v1914_v37, %v1912_v18  ;;  %3344 = vmatpush3.bf16.msra.mxu1 %v3767_v48  ;;  %v2120_v10 = vand.u32 4294901760, %v3978_v36  ;;  %v2131_v35 = vsub.f32 %v3804_v21, %v2130_v46  ;;  %3517 = vrsqrt.f32 %v4005_v14 }
 0x37a   :  { %v4021_v15 = vadd.f32 %v2680_v3, %v2678_v29  ;;  %v4024_v2 = vsub.f32 %v1996_v24, %v4009_v17  ;;  %3054 = vmatmul.mubr.f32.vlgmr.msra.gmra.mrb[8].mxu0 %v2066_v9  ;;  %3345 = vmatprep.subr.bf16.mxu1 %v3588_v50  ;;  %v4028_v16 = vsub.f32 %v1993_v1, %v4011_v19  ;;  %v2126_v44 = vand.u32 4294901760, %v3983_v45 }
 0x37b   :  { %3293 = vmatpush3.bf16.msra.mxu0 %v3292_v26  ;;  %3056 = vmatprep.mubr.msk.f32.mxu0 %vm3589_vm1, %v3587_v25  ;;  %v2137_v36 = vsub.f32 %v3807_v23, %v2136_v52  ;;  %v2143_v57 = vsub.f32 %v3829_v58, %v4242_v8  ;;  %v2149_v7 = vsub.f32 %v3831_v59, %v4241_v22  ;;  %3519 = vrsqrt.f32 %v3996_v11 }
 0x37c   :  { %3139 = vmatmul.mubr.f32.gmra.mrb[4].mxu1 %v4024_v2  ;;  %3294 = vmatprep.subr.bf16.mxu0 %v3588_v50  ;;  %v2074_v26 = vand.u32 4294901760, %v4024_v2  ;;  %v2084_v45 = vand.u32 4294901760, %v4028_v16  ;;  %3521 = vrsqrt.f32 %v4021_v15  ;;  %v2154_v41 = vand.u32 4294901760, %v3852_v31 }
 0x37d   :  { %3141 = vmatprep.mubr.msk.f32.mxu1 %vm3589_vm1, %v3587_v25  ;;  %3347 = vmatpush3.bf16.msra.mxu1 %v3769_v49  ;;  %v2160_v18 = vand.u32 4294901760, %v3854_v33  ;;  %3523 = vrsqrt.f32 %v4013_v56  ;;  %v1938_v29 = vsub.f32 %v3757_v38, %v3955_v4  ;;  %v3298_v37 = vpack.c.bf16 %v2126_v44, %v2120_v10 }
 0x37e   :  { %v2075_v43 = vsub.f32 %v4024_v2, %v2074_v26  ;;  %3348 = vmatprep.subr.bf16.mxu1 %v3588_v50  ;;  %v2085_v20 = vsub.f32 %v4028_v16, %v2084_v45  ;;  %v2132_v24 = vand.u32 4294901760, %v2131_v35  ;;  %v2138_v1 = vand.u32 4294901760, %v2137_v36 }
 0x37f   :  { %3296 = vmatpush3.bf16.msra.mxu0 %v3973_v34  ;;  %v1939_v3 = vand.u32 2147483647, %v1937_v27  ;;  %v2144_v9 = vand.u32 4294901760, %v2143_v57  ;;  %v2150_v22 = vand.u32 4294901760, %v2149_v7  ;;  %v2155_v8 = vsub.f32 %v3852_v31, %v2154_v41 }
 0x380   :  { %3142 = vmatmul.mubr.f32.gmra.mrb[6].mxu1 %v4028_v16  ;;  %v2076_v38 = vand.u32 4294901760, %v2075_v43  ;;  %3297 = vmatprep.subr.bf16.mxu0 %v3588_v50  ;;  %v2161_v34 = vsub.f32 %v3854_v33, %v2160_v18  ;;  %v2086_v40 = vand.u32 4294901760, %v2085_v20  ;;  %v1940_v27 = vand.u32 2147483647, %v1938_v29 }
 0x381   :  { %3350 = vmatpush3.bf16.msra.mxu1 %v3776_v55  ;;  %3176 = vmatprep.mubr.msk.f32.mxu1 %vm3589_vm1, %v3587_v25  ;;  %v3301_v10 = vpack.c.bf16 %v2138_v1, %v2132_v24  ;;  %v1941_v35 = vmul.f32 0.0069444445, %v1939_v3  ;;  %v3304_v44 = vpack.c.bf16 %v2150_v22, %v2144_v9  ;;  %v2156_v57 = vand.u32 4294901760, %v2155_v8 }
 0x382   :  { %3057 = vmatmul.mubr.f32.gmra.mrb[10].mxu0 %v2076_v38  ;;  %3351 = vmatprep.subr.bf16.mxu1 %v3588_v50  ;;  %vm2685_vm4 = vcmp.eq.f32.partialorder %v4005_v14, inf  ;;  %vm2687_vm5 = vcmp.eq.f32.partialorder %v4005_v14, 0.0  ;;  %v2688_v29 = vand.u32 2147483648, %v4005_v14  ;;  %v2162_v43 = vand.u32 4294901760, %v2161_v34 }
 0x383   :  { %v3518_v4 = vpop.eup %3517  ;;  %3059 = vmatprep.mubr.msk.f32.mxu0 %vm3589_vm1, %v3587_v25  ;;  %3299 = vmatpush3.bf16.msra.mxu0 %v3298_v37  ;;  %vm1919_vm6 = vcmp.eq.f32.partialorder %v3996_v11, inf  ;;  %vm1921_vm7 = vcmp.eq.f32.partialorder %v3996_v11, 0.0  ;;  %vm2692_vm8 = vcmp.eq.f32.partialorder %v4021_v15, inf  ;;  %vm2694_vm9 = vcmp.eq.f32.partialorder %v4021_v15, 0.0 }
 0x384   :  { %3300 = vmatprep.subr.bf16.mxu0 %v3588_v50  ;;  %v2684_v36 = vmul.f32 %v3518_v4, %v4005_v14  ;;  %v1922_v1 = vand.u32 2147483648, %v3996_v11  ;;  %v2695_v38 = vand.u32 2147483648, %v4021_v15  ;;  %vm1926_vm10 = vcmp.eq.f32.partialorder %v4013_v56, inf }
 0x385   :  { %v3520_v7 = vpop.eup %3519  ;;  %3353 = vmatpush3.bf16.msra.mxu1 %v3796_v5  ;;  %vm1928_vm11 = vcmp.eq.f32.partialorder %v4013_v56, 0.0  ;;  %v3379_v21 = vpack.c.bf16 %v2160_v18, %v2154_v41 }
 0x386   :  { %v3522_v20 = vpop.eup %3521  ;;  %3060 = vmatmul.mubr.f32.gmra.mrb[12].mxu0 %v2086_v40  ;;  %3354 = vmatprep.subr.bf16.mxu1 %v3588_v50  ;;  %v2686_v22 = vsel %vm2685_vm4, %v4005_v14, %v2684_v36  ;;  %v1918_v37 = vmul.f32 %v3520_v7, %v3996_v11 }
 0x387   :  { %v3524_v8 = vpop.eup %3523  ;;  %3302 = vmatpush3.bf16.msra.mxu0 %v3301_v10  ;;  %v2691_v24 = vmul.f32 %v3522_v20, %v4021_v15  ;;  %3094 = vmatprep.mubr.msk.f32.mxu0 %vm3589_vm1, %v3587_v25  ;;  %v2689_v3 = vsel %vm2687_vm5, %v2688_v29, %v2686_v22  ;;  %v1929_v10 = vand.u32 2147483648, %v4013_v56  ;;  %v3307_v20 = vpack.c.bf16 %v2162_v43, %v2156_v57 }
 0x388   :  { %3303 = vmatprep.subr.bf16.mxu0 %v3588_v50  ;;  %v1920_v9 = vsel %vm1919_vm6, %v3996_v11, %v1918_v37  ;;  %v1925_v34 = vmul.f32 %v3524_v8, %v4013_v56  ;;  %v2699_v11 = vrot.slane %v2689_v3, 1  ;;  %v1942_v37 = vmul.f32 0.0069444445, %v1940_v27 }
 0x389   :  { %3356 = vmatpush3.bf16.msra.mxu1 %v3823_v28  ;;  %v2693_v40 = vsel %vm2692_vm8, %v4021_v15, %v2691_v24  ;;  %v1923_v4 = vsel %vm1921_vm7, %v1922_v1, %v1920_v9  ;;  %v4243_v57 = vand.u32 4294901760, %v3780_v60  ;;  %v4244_v27 = vand.u32 4294901760, %v3782_v61 }
 0x38a   :  { %3357 = vmatprep.subr.bf16.mxu1 %v3588_v50  ;;  %v2696_v36 = vsel %vm2694_vm9, %v2695_v38, %v2693_v40  ;;  %v1927_v14 = vsel %vm1926_vm10, %v4013_v56, %v1925_v34  ;;  %v1931_v7 = vmul.f32 0.013888889, %v1923_v4  ;;  %v4245_v43 = vand.u32 4294901760, %v3784_v32 }
 0x38b   :  { %3305 = vmatpush3.bf16.msra.mxu0 %v3304_v44  ;;  %v2700_v29 = vrot.slane %v2696_v36, 1  ;;  %v1930_v22 = vsel %vm1928_vm11, %v1929_v10, %v1927_v14  ;;  %v4246_v60 = vand.u32 4294901760, %v3786_v62  ;;  %v3373_v32 = vpack.c.bf16 %v2136_v52, %v2130_v46 }
 0x38c   :  { %3306 = vmatprep.subr.bf16.mxu0 %v3588_v50  ;;  %v1932_v15 = vmul.f32 0.013888889, %v1930_v22  ;;  %v1943_v8 = vadd.f32 %v1941_v35, %v1931_v7  ;;  %v3364_v35 = vpack.c.bf16 %v4244_v27, %v4243_v57  ;;  %v4249_v62 = vand.u32 4294901760, %v3829_v58  ;;  %v2771_v7 = vld [vmem:[%s4233_s6] ss:$0 sm:$0xff] }
 0x38d   :  { %3359 = vmatpush3.bf16.msra.mxu1 %v3910_v6  ;;  %v2701_v24 = vsel %vm2633_vm3, %v2699_v11, %v2700_v29  ;;  %v3367_v61 = vpack.c.bf16 %v4246_v60, %v4245_v43 }
 0x38e   :  { %2703 = vadd.xlane.f32.xlu1 %v2701_v24  ;;  %3360 = vmatprep.subr.bf16.mxu1 %v3588_v50  ;;  %v1944_v1 = vadd.f32 %v1942_v37, %v1932_v15 }
 0x38f   :  { %3308 = vmatpush3.bf16.msra.mxu0 %v3307_v20 }
 0x390   :  { %3309 = vmatprep.subr.bf16.mxu0 %v3588_v50  ;;  %v1946_v56 = vsel %vm1945_vm2, %v1944_v1, 0.0 }
 0x391   :  { %3362 = vmatpush3.bf16.msra.mxu1 %v3916_v13  ;;  %v1947_v44 = vadd.f32 %v1946_v56, %v1943_v8 }
 0x392   :  { %3363 = vmatprep.subr.bf16.mxu1 %v3588_v50 }
 0x393   :  { %1948 = vadd.xlane.f32.xlu0 %v1947_v44  ;;  %3311 = vmatpush3.bf16.msra.mxu0 %v3928_v51  ;;  %v4247_v51 = vand.u32 4294901760, %v3788_v63  ;;  %v4250_v63 = vand.u32 4294901760, %v3831_v59 }
 0x394   :  { %3177 = vmatmul.mubr.f32.vlgmr.msra.gmra.mrb[2].mxu1 %v2064_v30  ;;  %3312 = vmatprep.subr.bf16.mxu0 %v3588_v50  ;;  %v4248_v30 = vand.u32 4294901760, %v3790_v0 }
 0x395   :  { %3365 = vmatpush3.bf16.msra.mxu1 %v3364_v35  ;;  %3179 = vmatprep.mubr.msk.f32.mxu1 %vm3589_vm1, %v3587_v25  ;;  %v3376_v0 = vpack.c.bf16 %v4250_v63, %v4249_v62 }
 0x396   :  { %3366 = vmatprep.subr.bf16.mxu1 %v3588_v50  ;;  %v3370_v12 = vpack.c.bf16 %v4248_v30, %v4247_v51 }
 0x397   :  { %3314 = vmatpush3.bf16.msra.mxu0 %v3930_v39 }
 0x398   :  { %3180 = vmatmul.mubr.f32.gmra.mrb[4].mxu1 %v2074_v26 }
 0x399   :  { %3368 = vmatpush3.bf16.msra.mxu1 %v3367_v61  ;;  %3182 = vmatprep.mubr.msk.f32.mxu1 %vm3589_vm1, %v3587_v25 }
 0x39a   :  { %3095 = vmatmul.mubr.f32.vlgmr.msra.gmra.mrb[8].mxu0 %v3987_v53  ;;  %3369 = vmatprep.subr.bf16.mxu1 %v3588_v50 }
 0x39b   :  { %3097 = vmatprep.mubr.msk.f32.mxu0 %vm3589_vm1, %v3587_v25 }
 0x39c   :  { %3183 = vmatmul.mubr.f32.gmra.mrb[6].mxu1 %v2084_v45 }
 0x39d   :  { %3371 = vmatpush3.bf16.msra.mxu1 %v3370_v12  ;;  %3217 = vmatprep.mubr.msk.f32.mxu1 %vm3589_vm1, %v3587_v25 }
 0x39e   :  { %3098 = vmatmul.mubr.f32.gmra.mrb[10].mxu0 %v4009_v17  ;;  %3372 = vmatprep.subr.bf16.mxu1 %v3588_v50 }
 0x39f   :  { %3100 = vmatprep.mubr.msk.f32.mxu0 %vm3589_vm1, %v3587_v25 }
 0x3a1   :  { %3374 = vmatpush3.bf16.msra.mxu1 %v3373_v32 }
 0x3a2   :  { %3101 = vmatmul.mubr.f32.gmra.mrb[12].mxu0 %v4011_v19  ;;  %3375 = vmatprep.subr.bf16.mxu1 %v3588_v50 }
 0x3a5   :  { %3377 = vmatpush3.bf16.msra.mxu1 %v3376_v0 }
 0x3a6   :  { %3378 = vmatprep.subr.bf16.mxu1 %v3588_v50 }
 0x3a9   :  { %3380 = vmatpush3.bf16.msra.mxu1 %v3379_v21 }
 0x3aa   :  { %3381 = vmatprep.subr.bf16.mxu1 %v3588_v50 }
 0x3ad   :  { %3383 = vmatpush3.bf16.msra.mxu1 %v3932_v42 }
 0x3ae   :  { %3384 = vmatprep.subr.bf16.mxu1 %v3588_v50 }
 0x3b1   :  { %3386 = vmatpush3.bf16.msra.mxu1 %v3934_v54 }
 0x3b2   :  { %3387 = vmatprep.subr.bf16.mxu1 %v3588_v50 }
 0x3b4   :  { %3218 = vmatmul.mubr.f32.vlgmr.msra.gmra.mrb[2].mxu1 %v3987_v53 }
 0x3b5   :  { %3389 = vmatpush3.bf16.msra.mxu1 %v3765_v47  ;;  %3220 = vmatprep.mubr.msk.f32.mxu1 %vm3589_vm1, %v3587_v25 }
 0x3b6   :  { %3390 = vmatprep.subr.bf16.mxu1 %v3588_v50 }
 0x3b8   :  { %3221 = vmatmul.mubr.f32.gmra.mrb[4].mxu1 %v4009_v17 }
 0x3b9   :  { %3392 = vmatpush3.bf16.msra.mxu1 %v3767_v48  ;;  %3223 = vmatprep.mubr.msk.f32.mxu1 %vm3589_vm1, %v3587_v25 }
 0x3ba   :  { %3393 = vmatprep.subr.bf16.mxu1 %v3588_v50 }
 0x3bc   :  { %3224 = vmatmul.mubr.f32.gmra.mrb[6].mxu1 %v4011_v19 }
 0x3bd   :  { %3395 = vmatpush3.bf16.msra.mxu1 %v3769_v49  ;;  %3258 = vmatprep.mubr.msk.f32.mxu1 %vm3589_vm1, %v3587_v25 }
 0x3be   :  { %3396 = vmatprep.subr.bf16.mxu1 %v3588_v50 }
 0x3c1   :  { %3398 = vmatpush3.bf16.msra.mxu1 %v3776_v55 }
 0x3c2   :  { %3399 = vmatprep.subr.bf16.mxu1 %v3588_v50 }
 0x3c5   :  { %3401 = vmatpush3.bf16.msra.mxu1 %v3796_v5 }
 0x3c6   :  { %3402 = vmatprep.subr.bf16.mxu1 %v3588_v50 }
 0x3c9   :  { %3404 = vmatpush3.bf16.msra.mxu1 %v3823_v28  ;;  %v3529_v28 = vld [vmem:[%s4230_s3] sm:$0xff] }
 0x3ca   :  { %3405 = vmatprep.subr.bf16.mxu1 %v3588_v50  ;;  %v2715_v58 = vrot.slane %v3529_v28, 7 }
 0x3cc   :  { %v2717_v59 = vsub.f32 %v3529_v28, %v2715_v58 }
 0x3cd   :  { %3407 = vmatpush3.bf16.msra.mxu1 %v3910_v6 }
 0x3ce   :  { %3408 = vmatprep.subr.bf16.mxu1 %v3588_v50  ;;  %v2718_v31 = vand.u32 2147483647, %v2717_v59 }
 0x3d0   :  { %v2720_v33 = vrot.slane %v2718_v31, 1 }
 0x3d1   :  { %3410 = vmatpush3.bf16.msra.mxu1 %v3916_v13 }
 0x3d4   :  { %3259 = vmatmul.mubr.f32.vlgmr.msra.gmra.mrb[2].mxu1 %v3987_v53 }
 0x3d5   :  { %3261 = vmatprep.mubr.msk.f32.mxu1 %vm3589_vm1, %v3587_v25 }
 0x3d8   :  { %3262 = vmatmul.mubr.f32.gmra.mrb[4].mxu1 %v4009_v17 }
 0x3d9   :  { %3264 = vmatprep.mubr.msk.f32.mxu1 %vm3589_vm1, %v3587_v25  ;;  %v2722_v25 = vsel %vm2633_vm3, %v2720_v33, 0.0 }
 0x3da   :  { %2723 = vadd.xlane.f32.xlu1 %v2722_v25 }
 0x3dc   :  { %3265 = vmatmul.mubr.f32.gmra.mrb[6].mxu1 %v4011_v19 }
 0x41b   :  { %v2704_v1 = vpop.xlane.xlu1 %2703 }
 0x41c   :  { %v2705_v44 = vrot.slane %v2704_v1, 4 }
 0x41e   :  { %v2706_v27 = vadd.f32 %v2705_v44, %v2704_v1 }
 0x420   :  { %v1949_v47 = vpop.xlane.xlu0 %1948  ;;  %v2707_v43 = vrot.slane %v2706_v27, 2 }
 0x421   :  { %v1950_v48 = vrot.slane %v1949_v47, 4 }
 0x422   :  { %v2708_v12 = vadd.f32 %v2707_v43, %v2706_v27 }
 0x423   :  { %v1951_v49 = vadd.f32 %v1950_v48, %v1949_v47 }
 0x424   :  { %v2709_v0 = vrot.slane %v2708_v12, 1 }
 0x425   :  { %v1952_v55 = vrot.slane %v1951_v49, 2 }
 0x427   :  { %v1953_v5 = vadd.f32 %v1952_v55, %v1951_v49  ;;  %v2710_v49 = vadd.f32 %v2709_v0, %v2708_v12 }
 0x429   :  { %v1954_v50 = vrot.slane %v1953_v5, 1 }
 0x42b   :  { %v1955_v23 = vadd.f32 %v1954_v50, %v1953_v5 }
 0x42d   :  { %3486 = vpush %v1955_v23 }
 0x45e   :  { %s3487_s6 = spop %3486 }
 0x467   :  { %v2724_v56 = vpop.xlane.xlu1 %2723 }
 0x468   :  { %v2725_v57 = vrot.slane %v2724_v56, 4 }
 0x46a   :  { %v2726_v35 = vadd.f32 %v2725_v57, %v2724_v56 }
 0x46c   :  { %v2727_v51 = vrot.slane %v2726_v35, 2 }
 0x46d   :  { %v2223_v6 = vpop.f32.mrb[8].mxu0 }
 0x46e   :  { %v3096_v13 = vpop.f32.mrb[9].mxu0  ;;  %v2728_v62 = vadd.f32 %v2727_v51, %v2726_v35 }
 0x470   :  { %v2729_v47 = vrot.slane %v2728_v62, 1 }
 0x471   :  { %v2229_v39 = vpop.f32.mrb[10].mxu0 }
 0x472   :  { %v3099_v42 = vpop.f32.mrb[11].mxu0  ;;  %v2730_v55 = vadd.f32 %v2729_v47, %v2728_v62 }
 0x475   :  { %v2235_v54 = vpop.f32.mrb[12].mxu0 }
 0x476   :  { %v3102_v46 = vpop.f32.mrb[13].mxu0 }
 0x4a7   :  { %v2612_v52 = vpop.f32.mrb[2].mxu1 }
 0x4a8   :  { %v3413_v53 = vadd.f32 %v2612_v52, %v2223_v6  ;;  %v3260_v17 = vpop.f32.mrb[3].mxu1 }
 0x4aa   :  { %v2628_v34 = vmul.f32 %v3413_v53, %v3413_v53 }
 0x4ab   :  { %v2618_v19 = vpop.f32.mrb[4].mxu1 }
 0x4ac   :  { %v3414_v2 = vadd.f32 %v2618_v19, %v2229_v39  ;;  %v3263_v16 = vpop.f32.mrb[5].mxu1 }
 0x4ae   :  { %v2629_v45 = vmul.f32 %v3414_v2, %v3414_v2 }
 0x4af   :  { %v2624_v26 = vpop.f32.mrb[6].mxu1 }
 0x4b0   :  { %v3415_v41 = vadd.f32 %v2624_v26, %v2235_v54  ;;  %v3266_v18 = vpop.f32.mrb[7].mxu1  ;;  %v2634_v38 = vrot.slane %v2629_v45, 1 }
 0x4b2   :  { %v2630_v3 = vmul.f32 %v3415_v41, %v3415_v41 }
 0x4b4   :  { %v2635_v9 = vrot.slane %v2630_v3, 1 }
 0x4b6   :  { %v2636_v40 = vsel %vm2633_vm3, %v2634_v38, %v2635_v9  ;;  %v2640_v4 = vadd.f32 %v2635_v9, %v2629_v45 }
 0x4b7   :  { %v2639_v10 = vadd.f32 %v2636_v40, %v2628_v34 }
 0x4b8   :  { %v2644_v36 = vadd.f32 1e-20, %v2640_v4  ;;  %vm2642_vm12 = vcmp.lt.f32.partialorder %v2640_v4, 25.0 }
 0x4b9   :  { %v2643_v14 = vadd.f32 1e-20, %v2639_v10  ;;  %vm2641_vm13 = vcmp.lt.f32.partialorder %v2639_v10, 25.0 }
 0x4ba   :  { %3525 = vrsqrt.f32 %v2644_v36 }
 0x4bb   :  { %3527 = vrsqrt.f32 %v2643_v14 }
 0x4c4   :  { %v3526_v11 = vpop.eup %3525 }
 0x4c5   :  { %v3528_v29 = vpop.eup %3527  ;;  %v2648_v20 = vsel %vm2642_vm12, %v3526_v11, 0.0 }
 0x4c6   :  { %v2647_v22 = vsel %vm2641_vm13, %v3528_v29, 0.0  ;;  %v2657_v15 = vmul.f32 %v2771_v7, %v2648_v20 }
 0x4c7   :  { %v2656_v37 = vmul.f32 %v2771_v7, %v2647_v22 }
 0x4c8   :  { %v2658_v8 = vsel %vm1945_vm2, %v2657_v15, 0.0 }
 0x4c9   :  { %v2659_v24 = vadd.f32 %v2658_v8, %v2656_v37 }
 0x4cb   :  { %2660 = vadd.xlane.f32.xlu0 %v2659_v24 }
 0x558   :  { %v2661_v60 = vpop.xlane.xlu0 %2660 }
 0x559   :  { %v2662_v61 = vrot.slane %v2661_v60, 4 }
 0x55b   :  { %v2663_v30 = vadd.f32 %v2662_v61, %v2661_v60 }
 0x55d   :  { %v2664_v32 = vrot.slane %v2663_v30, 2 }
 0x55f   :  { %v2665_v63 = vadd.f32 %v2664_v32, %v2663_v30 }
 0x561   :  { %v2666_v21 = vrot.slane %v2665_v63, 1 }
 0x563   :  { %v2667_v48 = vadd.f32 %v2666_v21, %v2665_v63 }
 0x565   :  { %3488 = vpush %v2667_v48 }
 0x566   :  { %3490 = vpush %v2710_v49 }
 0x567   :  { %3492 = vpush %v2730_v55 }
 0x596   :  { %s3489_s12 = spop %3488 }
 0x597   :  { %s2669_s13 = sadd.f32 %s3489_s12, %s3487_s6  ;;  %s3491_s14 = spop %3490 }
 0x598   :  { %s2712_s15 = smul.f32 0.0375, %s3491_s14  ;;  %s3493_s16 = spop %3492 }
 0x599   :  { %s2732_s20 = smul.f32 0.025, %s3493_s16 }
 0x59a   :  { %s2713_s19 = sadd.f32 %s2712_s15, %s2669_s13 }
 0x59c   :  { %s2733_s2 = sadd.f32 %s2732_s20, %s2713_s19 }
 0x59e   :  { %v2734_v5 = vstv %s2733_s2 }
 0x59f   :  { %2736 = vst.msk [vmem:[#allocation5] sm:$0x1] %vm2735_vm14, %v2734_v5 }
 0x5a0   :  { %3563 = shalt.err (!%p3560_p12)
}
 0x5a1   :  { %s3564_s23 = scalar_lea.hbm %s4234_s7, 16 }
 0x5a2   :  { %p3565_p13 = scmp.ne.s32.totalorder %s4234_s7, %s3564_s23  ;;  %p3568_p0 = scmp.lt.u32.totalorder %s3564_s23, %s4234_s7 }
 0x5a4   :  { %p3570_p1 = pnand %p3568_p0, %p3565_p13 }
 0x5a6   :  { %3573 = shalt.err (!%p3570_p1)
}
 0x5a7   :  { %2746 = dma.vmem_to_hbm [thread:$0]  %s2744_s18, 16, %s4234_s7, [#allocation4]  }
 0x5a8   :  { %3576 = dma.done.wait [#allocation4], 16  }
 0x5a9   :  { %3577 = vsyncadd [#allocation4], 4294967280 }
 0x5aa   :  { %2750 = vsyncpa [#allocation3], 1 }
 0x5ab   :  { %2751 = vsyncpa [#allocation4], 1 }

</bundles_post_ra>
